<compile_context>
chip_gen: v6e
topology: v6e:2x2x1
jax: 0.10.0
libtpu: 0.0.40
codegen_flags: <defaults>
</compile_context>

<pallas_src>
import math

import jax
import jax.numpy as jnp
from jax.experimental import pallas as pl
from jax.experimental.pallas import tpu as pltpu

# ---------------- small BERT config (consistent with the forward pass) -------
VOCAB = 64
HIDDEN = 32
NUM_LAYERS = 2
NUM_HEADS = 4
HEAD_DIM = HIDDEN // NUM_HEADS
INTERMEDIATE = 64
MAX_POS = 16
TYPE_VOCAB = 2
NUM_BIO = 3
LN_EPS = 1e-12

# ---- packed embedding-table slab layout (rows, width HIDDEN) ----
_TYPE_ROW = VOCAB                 # rows [64, 66) : token-type embeddings
_POS_ROW = VOCAB + 8              # rows [72, 88) : position embeddings (8-aligned)
_EMB_ROWS = _POS_ROW + MAX_POS    # 88 rows total

# ---- packed bias / LayerNorm slab layout (rows, width 128) ----
VEC_WIDTH = 128
ROW_EMB_LN_G = 0
ROW_EMB_LN_B = 1
ROW_LAYER_BASE = 2
VROWS_PER_LAYER = 8
(VR_BQKV, VR_BO, VR_LN1G, VR_LN1B, VR_BFF1, VR_BFF2, VR_LN2G, VR_LN2B) = range(8)
ROW_BIO_B = ROW_LAYER_BASE + NUM_LAYERS * VROWS_PER_LAYER   # 18
VEC_ROWS = 24                                               # padded to a multiple of 8


# ----------------------------- in-kernel helpers ------------------------------
def _layernorm(x, g, b):
    """LayerNorm over the last axis. x: (N, H) f32; g, b: (1, H) f32."""
    mean = jnp.mean(x, axis=-1, keepdims=True)
    var = jnp.mean(jnp.square(x - mean), axis=-1, keepdims=True)
    return (x - mean) * jax.lax.rsqrt(var + LN_EPS) * g + b


def _gelu(x):
    # TODO(synk): HF BERT default is exact erf-GELU; tanh approximation used here
    # (guaranteed Mosaic lowering; deviation is ~1e-3 absolute).
    c = math.sqrt(2.0 / math.pi)
    return 0.5 * x * (1.0 + jnp.tanh(c * (x + 0.044715 * x * x * x)))


# ------------------------------ fused model kernel ----------------------------
def _fused_model_kernel(
    ids_ref, tt_ref, am_ref,                 # per-batch activations: ids (BT,S,1) i32,
                                             # type ids (BT,S,1) i32, mask (BT,1,S) f32
    emb_ref,                                 # packed embedding tables  (88, H)   f32
    vec_ref,                                 # packed biases / LN vecs  (24, 128) f32
    wqkv_ref, wo_ref, wff1_ref, wff2_ref,    # per-layer weight stacks  bf16
    biow_ref,                                # BIO classifier weight    (H, 3)    bf16
    bio_ref, hs_ref,                         # outputs
):
    BT, S, _ = ids_ref.shape
    N = BT * S
    H = HIDDEN

    def vrow(r, w):
        # one packed parameter row -> (1, w), broadcasts over the N token rows
        return vec_ref[r:r + 1, 0:w]

    # ---- embeddings: in-kernel gather (one-hot matmul for the 64-entry vocab) ----
    onehot = (jax.lax.broadcasted_iota(jnp.int32, (BT, S, VOCAB), 2)
              == ids_ref[...]).astype(jnp.float32).reshape(N, VOCAB)
    word = jnp.dot(onehot, emb_ref[0:VOCAB, :], preferred_element_type=jnp.float32)

    tt = tt_ref[...].astype(jnp.float32).reshape(N, 1)          # type ids in {0,1}
    t0 = emb_ref[_TYPE_ROW:_TYPE_ROW + 1, :]
    t1 = emb_ref[_TYPE_ROW + 1:_TYPE_ROW + 2, :]
    type_emb = t0 + tt * (t1 - t0)                               # 2-entry vocab -> lerp

    pos_emb = jnp.tile(emb_ref[_POS_ROW:_POS_ROW + S, :], (BT, 1))   # (N, H)

    x = _layernorm(word + type_emb + pos_emb,
                   vrow(ROW_EMB_LN_G, H), vrow(ROW_EMB_LN_B, H))     # (N, H) f32

    # additive attention mask, tiled over heads; z-order = (head, batch)
    neg_mask = (1.0 - am_ref[...]) * -10000.0                        # (BT, 1, S)
    neg_mask = jnp.tile(neg_mask, (NUM_HEADS, 1, 1))                 # (NH*BT, 1, S)

    hidden = [x]
    for l in range(NUM_LAYERS):                                      # static unrolled loop
        base = ROW_LAYER_BASE + l * VROWS_PER_LAYER

        # ---- self-attention: one fused QKV matmul over all token rows ----
        qkv = (jnp.dot(x.astype(jnp.bfloat16), wqkv_ref[l],
                       preferred_element_type=jnp.float32)
               + vrow(base + VR_BQKV, 3 * H))                        # (N, 3H) f32
        qkv = qkv.astype(jnp.bfloat16)

        def split_heads(off):
            # (N, H) lane-block -> (NH*BT, S, Dh); leading-dim reshapes/concat only
            return jnp.concatenate(
                [qkv[:, off + h * HEAD_DIM: off + (h + 1) * HEAD_DIM]
                 .reshape(BT, S, HEAD_DIM) for h in range(NUM_HEADS)],
                axis=0)

        q = split_heads(0)            # 1/sqrt(Dh) already folded into the Q weights
        k = split_heads(H)
        v = split_heads(2 * H)

        # one batched score matmul + one softmax + one batched context matmul per layer
        s = jnp.einsum('zqd,zkd->zqk', q, k,
                       preferred_element_type=jnp.float32) + neg_mask    # (NH*BT, S, S)
        s = s - jnp.max(s, axis=-1, keepdims=True)
        p = jnp.exp(s)
        p = p * pl.reciprocal(jnp.sum(p, axis=-1, keepdims=True), approx=True)
        ctx = jnp.einsum('zqk,zkd->zqd', p.astype(jnp.bfloat16), v,
                         preferred_element_type=jnp.float32)             # (NH*BT, S, Dh)
        ctx = jnp.concatenate(
            [ctx[h * BT:(h + 1) * BT].reshape(N, HEAD_DIM) for h in range(NUM_HEADS)],
            axis=-1)                                                     # (N, H)

        attn = (jnp.dot(ctx.astype(jnp.bfloat16), wo_ref[l],
                        preferred_element_type=jnp.float32)
                + vrow(base + VR_BO, H))
        x = _layernorm(attn + x, vrow(base + VR_LN1G, H), vrow(base + VR_LN1B, H))

        # ---- feed-forward ----
        ff = (jnp.dot(x.astype(jnp.bfloat16), wff1_ref[l],
                      preferred_element_type=jnp.float32)
              + vrow(base + VR_BFF1, INTERMEDIATE))
        ff = _gelu(ff)
        ff = (jnp.dot(ff.astype(jnp.bfloat16), wff2_ref[l],
                      preferred_element_type=jnp.float32)
              + vrow(base + VR_BFF2, H))
        x = _layernorm(ff + x, vrow(base + VR_LN2G, H), vrow(base + VR_LN2B, H))
        hidden.append(x)

    # ---- BIO classifier + softmax (exact divide for output parity) ----
    logits = (jnp.dot(x.astype(jnp.bfloat16), biow_ref[...],
                      preferred_element_type=jnp.float32)
              + vrow(ROW_BIO_B, NUM_BIO))
    logits = logits - jnp.max(logits, axis=-1, keepdims=True)
    e = jnp.exp(logits)
    bio_ref[...] = (e / jnp.sum(e, axis=-1, keepdims=True)).reshape(BT, S, NUM_BIO)

    # all hidden states as one lane-dense slab -> single wide store per step
    hs_ref[...] = jnp.concatenate(hidden, axis=-1).reshape(BT, S, (NUM_LAYERS + 1) * H)


# ============================ parameter construction ==========================
def init_params(key):
    keys = iter(jax.random.split(key, 32))

    def nrm(shape):
        return jax.random.normal(next(keys), shape, jnp.float32) * 0.02

    def _row(v):
        v = jnp.asarray(v, jnp.float32).reshape(1, -1)
        return jnp.pad(v, ((0, 0), (0, VEC_WIDTH - v.shape[1])))

    H, L = HIDDEN, NUM_LAYERS
    scale = 1.0 / math.sqrt(HEAD_DIM)

    # --- packed embedding tables: word rows [0,64), type rows [64,66), pos rows [72,88)
    word = nrm((VOCAB, H))
    type_e = nrm((TYPE_VOCAB, H))
    pos = nrm((MAX_POS, H))
    emb_tables = jnp.concatenate(
        [word, type_e, jnp.zeros((_POS_ROW - VOCAB - TYPE_VOCAB, H), jnp.float32), pos],
        axis=0)                                                        # (88, H) f32

    # --- packed bias / LayerNorm slab + bf16 matmul weight stacks ---
    rows = [_row(jnp.ones((H,))), _row(jnp.zeros((H,)))]               # emb LN g, b
    wqkv_l, wo_l, wff1_l, wff2_l = [], [], [], []
    for _ in range(L):
        wq = nrm((H, H)) * scale          # fold 1/sqrt(Dh) into the Q projection
        wk, wv = nrm((H, H)), nrm((H, H))
        wqkv_l.append(jnp.concatenate([wq, wk, wv], axis=1))           # (H, 3H)
        wo_l.append(nrm((H, H)))
        wff1_l.append(nrm((H, INTERMEDIATE)))
        wff2_l.append(nrm((INTERMEDIATE, H)))
        rows += [
            _row(jnp.zeros((3 * H,))),         # bqkv (Q third would also need the scale fold if nonzero)
            _row(jnp.zeros((H,))),             # bo
            _row(jnp.ones((H,))),              # ln1 gamma
            _row(jnp.zeros((H,))),             # ln1 beta
            _row(jnp.zeros((INTERMEDIATE,))),  # bff1
            _row(jnp.zeros((H,))),             # bff2
            _row(jnp.ones((H,))),              # ln2 gamma
            _row(jnp.zeros((H,))),             # ln2 beta
        ]
    rows.append(_row(jnp.zeros((NUM_BIO,))))                           # bio bias
    vec = jnp.concatenate(rows, axis=0)
    vec = jnp.pad(vec, ((0, VEC_ROWS - vec.shape[0]), (0, 0)))         # (24, 128) f32

    return {
        "emb_tables": emb_tables,
        "vec": vec,
        "wqkv": jnp.stack(wqkv_l).astype(jnp.bfloat16),                # (L, H, 3H)
        "wo": jnp.stack(wo_l).astype(jnp.bfloat16),                    # (L, H, H)
        "wff1": jnp.stack(wff1_l).astype(jnp.bfloat16),                # (L, H, F)
        "wff2": jnp.stack(wff2_l).astype(jnp.bfloat16),                # (L, F, H)
        "bio_w": nrm((H, NUM_BIO)).astype(jnp.bfloat16),               # (H, 3)
    }


# ================================ forward pass ================================
def aml_forward(params, input_ids, attention_mask, token_type_ids):
    B, S = input_ids.shape
    assert S <= MAX_POS
    L = NUM_LAYERS

    # Single grid step for small B (all token rows batched together); for large B this
    # can be tiled by lowering BT, keeping many sequences per step.
    BT = B
    assert B % BT == 0
    grid = (B // BT,)

    ids3 = input_ids.astype(jnp.int32).reshape(B, S, 1)
    tt3 = token_type_ids.astype(jnp.int32).reshape(B, S, 1)
    am3 = attention_mask.astype(jnp.float32).reshape(B, 1, S)

    def const_spec(shape):
        nd = len(shape)
        return pl.BlockSpec(shape, lambda i, _nd=nd: (0,) * _nd)   # VMEM-resident weights

    in_specs = [
        pl.BlockSpec((BT, S, 1), lambda i: (i, 0, 0)),             # input ids
        pl.BlockSpec((BT, S, 1), lambda i: (i, 0, 0)),             # token type ids
        pl.BlockSpec((BT, 1, S), lambda i: (i, 0, 0)),             # attention mask
        const_spec((_EMB_ROWS, HIDDEN)),                           # embedding tables
        const_spec((VEC_ROWS, VEC_WIDTH)),                         # biases / LN vectors
        const_spec((L, HIDDEN, 3 * HIDDEN)),                       # fused QKV weights
        const_spec((L, HIDDEN, HIDDEN)),                           # attention out proj
        const_spec((L, HIDDEN, INTERMEDIATE)),                     # FFN up
        const_spec((L, INTERMEDIATE, HIDDEN)),                     # FFN down
        const_spec((HIDDEN, NUM_BIO)),                             # BIO classifier
    ]
    out_specs = (
        pl.BlockSpec((BT, S, NUM_BIO), lambda i: (i, 0, 0)),
        pl.BlockSpec((BT, S, (L + 1) * HIDDEN), lambda i: (i, 0, 0)),
    )
    out_shape = (
        jax.ShapeDtypeStruct((B, S, NUM_BIO), jnp.float32),
        jax.ShapeDtypeStruct((B, S, (L + 1) * HIDDEN), jnp.float32),
    )

    bio, hs = pl.pallas_call(
        _fused_model_kernel,
        out_shape=out_shape,
        grid=grid,
        in_specs=in_specs,
        out_specs=out_specs,
        compiler_params=pltpu.CompilerParams(dimension_semantics=("parallel",)),
    )(ids3, tt3, am3,
      params["emb_tables"], params["vec"],
      params["wqkv"], params["wo"], params["wff1"], params["wff2"], params["bio_w"])

    # mirrors: outputs = (BIO,) + outputs[2:]  (outputs[2] == tuple of all hidden_states)
    hidden_states = tuple(hs[..., l * HIDDEN:(l + 1) * HIDDEN] for l in range(L + 1))
    return bio, hidden_states


# ==================================== main ====================================
if __name__ == "__main__":
    key = jax.random.PRNGKey(0)
    pkey, dkey = jax.random.split(key)
    params = init_params(pkey)

    B, S = 2, 8
    input_ids = jax.random.randint(dkey, (B, S), 0, VOCAB, dtype=jnp.int32)
    attention_mask = jnp.ones((B, S), jnp.int32).at[1, 6:].set(0)   # pad tail of seq 1
    token_type_ids = jnp.zeros((B, S), jnp.int32).at[:, 4:].set(1)

    outputs = jax.jit(aml_forward)(params, input_ids, attention_mask, token_type_ids)
    bio, hidden_states = outputs
    jax.block_until_ready(bio)
    jax.block_until_ready(hidden_states)

    assert bio.shape == (B, S, NUM_BIO)
    assert len(hidden_states) == NUM_LAYERS + 1
    assert all(h.shape == (B, S, HIDDEN) for h in hidden_states)
    assert bool(jnp.all(jnp.isfinite(bio)))
    # softmax rows sum to 1 (final softmax uses an exact divide)
    assert jnp.allclose(jnp.sum(bio, axis=-1), 1.0, atol=1e-5)
    print("KERNEL_OK")
</pallas_src>

<mosaic_0001>
module attributes {stable_mosaic.version = 11 : i64} {
  func.func @_fused_model_kernel(%arg0: i32, %arg1: memref<2x8x1xi32, #tpu.memory_space<vmem>>, %arg2: memref<2x8x1xi32, #tpu.memory_space<vmem>>, %arg3: memref<2x1x8xf32, #tpu.memory_space<vmem>>, %arg4: memref<88x32xf32, #tpu.memory_space<vmem>>, %arg5: memref<24x128xf32, #tpu.memory_space<vmem>>, %arg6: memref<2x32x96xbf16, #tpu.memory_space<vmem>>, %arg7: memref<2x32x32xbf16, #tpu.memory_space<vmem>>, %arg8: memref<2x32x64xbf16, #tpu.memory_space<vmem>>, %arg9: memref<2x64x32xbf16, #tpu.memory_space<vmem>>, %arg10: memref<32x3xbf16, #tpu.memory_space<vmem>>, %arg11: memref<2x8x3xf32, #tpu.memory_space<vmem>>, %arg12: memref<2x8x96xf32, #tpu.memory_space<vmem>>) attributes {dimension_semantics = [#tpu.dimension_semantics<parallel>], iteration_bounds = array<i64: 1>, scalar_prefetch = 0 : i64, scratch_operands = 0 : i64, tpu.core_type = #tpu.core_type<tc>, window_params = [{transform_indices = @transform_0, window_bounds = array<i64: 2, 8, 1>}, {transform_indices = @transform_1, window_bounds = array<i64: 2, 8, 1>}, {transform_indices = @transform_2, window_bounds = array<i64: 2, 1, 8>}, {pipeline_mode = #tpu.pipeline_mode<synchronous>, transform_indices = @transform_3, window_bounds = array<i64: 88, 32>}, {pipeline_mode = #tpu.pipeline_mode<synchronous>, transform_indices = @transform_4, window_bounds = array<i64: 24, 128>}, {pipeline_mode = #tpu.pipeline_mode<synchronous>, transform_indices = @transform_5, window_bounds = array<i64: 2, 32, 96>}, {pipeline_mode = #tpu.pipeline_mode<synchronous>, transform_indices = @transform_6, window_bounds = array<i64: 2, 32, 32>}, {pipeline_mode = #tpu.pipeline_mode<synchronous>, transform_indices = @transform_7, window_bounds = array<i64: 2, 32, 64>}, {pipeline_mode = #tpu.pipeline_mode<synchronous>, transform_indices = @transform_8, window_bounds = array<i64: 2, 64, 32>}, {pipeline_mode = #tpu.pipeline_mode<synchronous>, transform_indices = @transform_9, window_bounds = array<i64: 32, 3>}, {transform_indices = @transform_10, window_bounds = array<i64: 2, 8, 3>}, {transform_indices = @transform_11, window_bounds = array<i64: 2, 8, 96>}]} {
    %0 = tpu.iota {dimensions = array<i32: 2>} : vector<2x8x64xi32>
    %c0 = arith.constant 0 : index
    %c0_0 = arith.constant 0 : index
    %c0_1 = arith.constant 0 : index
    %1 = vector.load %arg1[%c0, %c0_0, %c0_1] : memref<2x8x1xi32, #tpu.memory_space<vmem>>, vector<2x8x1xi32>
    %2 = vector.broadcast %1 : vector<2x8x1xi32> to vector<2x8x64xi32>
    %3 = arith.cmpi eq, %0, %2 : vector<2x8x64xi32>
    %4 = arith.extui %3 : vector<2x8x64xi1> to vector<2x8x64xi32>
    %5 = arith.sitofp %4 : vector<2x8x64xi32> to vector<2x8x64xf32>
    %6 = vector.shape_cast %5 : vector<2x8x64xf32> to vector<16x64xf32>
    %c0_2 = arith.constant 0 : index
    %c0_3 = arith.constant 0 : index
    %7 = vector.load %arg4[%c0_2, %c0_3] : memref<88x32xf32, #tpu.memory_space<vmem>>, vector<64x32xf32>
    %cst = arith.constant dense<0.000000e+00> : vector<16x32xf32>
    %8 = tpu.matmul %6, %7, %cst {dimension_numbers = #tpu.dot_dimension_numbers<[1], [0], [0], [1], [0, 0, 1, 1], [], []>} : vector<16x64xf32>, vector<64x32xf32>, vector<16x32xf32> -> vector<16x32xf32>
    %c0_4 = arith.constant 0 : index
    %c0_5 = arith.constant 0 : index
    %c0_6 = arith.constant 0 : index
    %9 = vector.load %arg2[%c0_4, %c0_5, %c0_6] : memref<2x8x1xi32, #tpu.memory_space<vmem>>, vector<2x8x1xi32>
    %10 = arith.sitofp %9 : vector<2x8x1xi32> to vector<2x8x1xf32>
    %11 = vector.shape_cast %10 : vector<2x8x1xf32> to vector<16x1xf32>
    %c64 = arith.constant 64 : index
    %c0_7 = arith.constant 0 : index
    %12 = vector.load %arg4[%c64, %c0_7] : memref<88x32xf32, #tpu.memory_space<vmem>>, vector<1x32xf32>
    %c65 = arith.constant 65 : index
    %c0_8 = arith.constant 0 : index
    %13 = vector.load %arg4[%c65, %c0_8] : memref<88x32xf32, #tpu.memory_space<vmem>>, vector<1x32xf32>
    %14 = arith.subf %13, %12 : vector<1x32xf32>
    %15 = vector.broadcast %11 : vector<16x1xf32> to vector<16x32xf32>
    %16 = vector.broadcast %14 : vector<1x32xf32> to vector<16x32xf32>
    %17 = arith.mulf %15, %16 : vector<16x32xf32>
    %18 = vector.broadcast %12 : vector<1x32xf32> to vector<16x32xf32>
    %19 = arith.addf %18, %17 : vector<16x32xf32>
    %c72 = arith.constant 72 : index
    %c0_9 = arith.constant 0 : index
    %20 = vector.load %arg4[%c72, %c0_9] : memref<88x32xf32, #tpu.memory_space<vmem>>, vector<8x32xf32>
    %21 = tpu.concatenate %20, %20 in 0 : vector<8x32xf32>, vector<8x32xf32> -> vector<16x32xf32>
    %22 = arith.addf %8, %19 : vector<16x32xf32>
    %23 = arith.addf %22, %21 : vector<16x32xf32>
    %c0_10 = arith.constant 0 : index
    %c0_11 = arith.constant 0 : index
    %24 = vector.load %arg5[%c0_10, %c0_11] : memref<24x128xf32, #tpu.memory_space<vmem>>, vector<1x32xf32>
    %c1 = arith.constant 1 : index
    %c0_12 = arith.constant 0 : index
    %25 = vector.load %arg5[%c1, %c0_12] : memref<24x128xf32, #tpu.memory_space<vmem>>, vector<1x32xf32>
    %cst_13 = arith.constant dense<0.000000e+00> : vector<16xf32>
    %26 = vector.multi_reduction <add>, %23, %cst_13 [1] : vector<16x32xf32> to vector<16xf32>
    %27 = vector.shape_cast %26 : vector<16xf32> to vector<16x1xf32>
    %cst_14 = arith.constant 3.200000e+01 : f32
    %28 = vector.broadcast %cst_14 : f32 to vector<16x1xf32>
    %29 = arith.divf %27, %28 : vector<16x1xf32>
    %30 = vector.broadcast %29 : vector<16x1xf32> to vector<16x32xf32>
    %31 = arith.subf %23, %30 : vector<16x32xf32>
    %32 = arith.mulf %31, %31 : vector<16x32xf32>
    %cst_15 = arith.constant dense<0.000000e+00> : vector<16xf32>
    %33 = vector.multi_reduction <add>, %32, %cst_15 [1] : vector<16x32xf32> to vector<16xf32>
    %34 = vector.shape_cast %33 : vector<16xf32> to vector<16x1xf32>
    %cst_16 = arith.constant 3.200000e+01 : f32
    %35 = vector.broadcast %cst_16 : f32 to vector<16x1xf32>
    %36 = arith.divf %34, %35 : vector<16x1xf32>
    %37 = vector.broadcast %29 : vector<16x1xf32> to vector<16x32xf32>
    %38 = arith.subf %23, %37 : vector<16x32xf32>
    %cst_17 = arith.constant 9.99999996E-13 : f32
    %39 = vector.broadcast %cst_17 : f32 to vector<16x1xf32>
    %40 = arith.addf %36, %39 : vector<16x1xf32>
    %41 = math.rsqrt %40 : vector<16x1xf32>
    %42 = vector.broadcast %41 : vector<16x1xf32> to vector<16x32xf32>
    %43 = arith.mulf %38, %42 : vector<16x32xf32>
    %44 = vector.broadcast %24 : vector<1x32xf32> to vector<16x32xf32>
    %45 = arith.mulf %43, %44 : vector<16x32xf32>
    %46 = vector.broadcast %25 : vector<1x32xf32> to vector<16x32xf32>
    %47 = arith.addf %45, %46 : vector<16x32xf32>
    %c0_18 = arith.constant 0 : index
    %c0_19 = arith.constant 0 : index
    %c0_20 = arith.constant 0 : index
    %48 = vector.load %arg3[%c0_18, %c0_19, %c0_20] : memref<2x1x8xf32, #tpu.memory_space<vmem>>, vector<2x1x8xf32>
    %cst_21 = arith.constant 1.000000e+00 : f32
    %49 = vector.broadcast %cst_21 : f32 to vector<2x1x8xf32>
    %50 = arith.subf %49, %48 : vector<2x1x8xf32>
    %cst_22 = arith.constant -1.000000e+04 : f32
    %51 = vector.broadcast %cst_22 : f32 to vector<2x1x8xf32>
    %52 = arith.mulf %50, %51 : vector<2x1x8xf32>
    %53 = tpu.concatenate %52, %52, %52, %52 in 0 : vector<2x1x8xf32>, vector<2x1x8xf32>, vector<2x1x8xf32>, vector<2x1x8xf32> -> vector<8x1x8xf32>
    %54 = arith.truncf %47 : vector<16x32xf32> to vector<16x32xbf16>
    %c0_23 = arith.constant 0 : index
    %c0_24 = arith.constant 0 : index
    %c0_25 = arith.constant 0 : index
    %55 = vector.load %arg6[%c0_23, %c0_24, %c0_25] : memref<2x32x96xbf16, #tpu.memory_space<vmem>>, vector<1x32x96xbf16>
    %56 = vector.shape_cast %55 : vector<1x32x96xbf16> to vector<32x96xbf16>
    %cst_26 = arith.constant dense<0.000000e+00> : vector<16x96xf32>
    %57 = tpu.matmul %54, %56, %cst_26 {dimension_numbers = #tpu.dot_dimension_numbers<[1], [0], [0], [1], [0, 0, 1, 1], [], []>} : vector<16x32xbf16>, vector<32x96xbf16>, vector<16x96xf32> -> vector<16x96xf32>
    %c2 = arith.constant 2 : index
    %c0_27 = arith.constant 0 : index
    %58 = vector.load %arg5[%c2, %c0_27] : memref<24x128xf32, #tpu.memory_space<vmem>>, vector<1x96xf32>
    %59 = vector.broadcast %58 : vector<1x96xf32> to vector<16x96xf32>
    %60 = arith.addf %57, %59 : vector<16x96xf32>
    %61 = arith.truncf %60 : vector<16x96xf32> to vector<16x96xbf16>
    %62 = vector.extract_strided_slice %61 {offsets = [0, 0], sizes = [16, 8], strides = [1, 1]} : vector<16x96xbf16> to vector<16x8xbf16>
    %63 = vector.shape_cast %62 : vector<16x8xbf16> to vector<2x8x8xbf16>
    %64 = vector.extract_strided_slice %61 {offsets = [0, 8], sizes = [16, 8], strides = [1, 1]} : vector<16x96xbf16> to vector<16x8xbf16>
    %65 = vector.shape_cast %64 : vector<16x8xbf16> to vector<2x8x8xbf16>
    %66 = vector.extract_strided_slice %61 {offsets = [0, 16], sizes = [16, 8], strides = [1, 1]} : vector<16x96xbf16> to vector<16x8xbf16>
    %67 = vector.shape_cast %66 : vector<16x8xbf16> to vector<2x8x8xbf16>
    %68 = vector.extract_strided_slice %61 {offsets = [0, 24], sizes = [16, 8], strides = [1, 1]} : vector<16x96xbf16> to vector<16x8xbf16>
    %69 = vector.shape_cast %68 : vector<16x8xbf16> to vector<2x8x8xbf16>
    %70 = tpu.concatenate %63, %65, %67, %69 in 0 : vector<2x8x8xbf16>, vector<2x8x8xbf16>, vector<2x8x8xbf16>, vector<2x8x8xbf16> -> vector<8x8x8xbf16>
    %71 = vector.extract_strided_slice %61 {offsets = [0, 32], sizes = [16, 8], strides = [1, 1]} : vector<16x96xbf16> to vector<16x8xbf16>
    %72 = vector.shape_cast %71 : vector<16x8xbf16> to vector<2x8x8xbf16>
    %73 = vector.extract_strided_slice %61 {offsets = [0, 40], sizes = [16, 8], strides = [1, 1]} : vector<16x96xbf16> to vector<16x8xbf16>
    %74 = vector.shape_cast %73 : vector<16x8xbf16> to vector<2x8x8xbf16>
    %75 = vector.extract_strided_slice %61 {offsets = [0, 48], sizes = [16, 8], strides = [1, 1]} : vector<16x96xbf16> to vector<16x8xbf16>
    %76 = vector.shape_cast %75 : vector<16x8xbf16> to vector<2x8x8xbf16>
    %77 = vector.extract_strided_slice %61 {offsets = [0, 56], sizes = [16, 8], strides = [1, 1]} : vector<16x96xbf16> to vector<16x8xbf16>
    %78 = vector.shape_cast %77 : vector<16x8xbf16> to vector<2x8x8xbf16>
    %79 = tpu.concatenate %72, %74, %76, %78 in 0 : vector<2x8x8xbf16>, vector<2x8x8xbf16>, vector<2x8x8xbf16>, vector<2x8x8xbf16> -> vector<8x8x8xbf16>
    %80 = vector.extract_strided_slice %61 {offsets = [0, 64], sizes = [16, 8], strides = [1, 1]} : vector<16x96xbf16> to vector<16x8xbf16>
    %81 = vector.shape_cast %80 : vector<16x8xbf16> to vector<2x8x8xbf16>
    %82 = vector.extract_strided_slice %61 {offsets = [0, 72], sizes = [16, 8], strides = [1, 1]} : vector<16x96xbf16> to vector<16x8xbf16>
    %83 = vector.shape_cast %82 : vector<16x8xbf16> to vector<2x8x8xbf16>
    %84 = vector.extract_strided_slice %61 {offsets = [0, 80], sizes = [16, 8], strides = [1, 1]} : vector<16x96xbf16> to vector<16x8xbf16>
    %85 = vector.shape_cast %84 : vector<16x8xbf16> to vector<2x8x8xbf16>
    %86 = vector.extract_strided_slice %61 {offsets = [0, 88], sizes = [16, 8], strides = [1, 1]} : vector<16x96xbf16> to vector<16x8xbf16>
    %87 = vector.shape_cast %86 : vector<16x8xbf16> to vector<2x8x8xbf16>
    %88 = tpu.concatenate %81, %83, %85, %87 in 0 : vector<2x8x8xbf16>, vector<2x8x8xbf16>, vector<2x8x8xbf16>, vector<2x8x8xbf16> -> vector<8x8x8xbf16>
    "tpu.trace_start"() <{level = 10 : i32, message = "zqd,zkd->zqk"}> : () -> ()
    %cst_28 = arith.constant dense<0.000000e+00> : vector<8x8x8xf32>
    %89 = tpu.matmul %70, %79, %cst_28 {dimension_numbers = #tpu.dot_dimension_numbers<[2], [2], [1], [1], [0, 0, 0, 1, 1, 1], [0], [0]>} : vector<8x8x8xbf16>, vector<8x8x8xbf16>, vector<8x8x8xf32> -> vector<8x8x8xf32>
    "tpu.trace_stop"() : () -> ()
    %90 = vector.broadcast %53 : vector<8x1x8xf32> to vector<8x8x8xf32>
    %91 = arith.addf %89, %90 : vector<8x8x8xf32>
    %cst_29 = arith.constant dense<0xFF800000> : vector<8x8xf32>
    %92 = vector.multi_reduction <maximumf>, %91, %cst_29 [2] : vector<8x8x8xf32> to vector<8x8xf32>
    %93 = vector.shape_cast %92 : vector<8x8xf32> to vector<8x8x1xf32>
    %94 = vector.broadcast %93 : vector<8x8x1xf32> to vector<8x8x8xf32>
    %95 = arith.subf %91, %94 : vector<8x8x8xf32>
    %96 = math.exp %95 : vector<8x8x8xf32>
    %cst_30 = arith.constant dense<0.000000e+00> : vector<8x8xf32>
    %97 = vector.multi_reduction <add>, %96, %cst_30 [2] : vector<8x8x8xf32> to vector<8x8xf32>
    %98 = vector.shape_cast %97 : vector<8x8xf32> to vector<8x8x1xf32>
    %99 = tpu.reciprocal %98 {approx = true} : vector<8x8x1xf32> -> vector<8x8x1xf32>
    %100 = vector.broadcast %99 : vector<8x8x1xf32> to vector<8x8x8xf32>
    %101 = arith.mulf %96, %100 : vector<8x8x8xf32>
    %102 = arith.truncf %101 : vector<8x8x8xf32> to vector<8x8x8xbf16>
    "tpu.trace_start"() <{level = 10 : i32, message = "zqk,zkd->zqd"}> : () -> ()
    %cst_31 = arith.constant dense<0.000000e+00> : vector<8x8x8xf32>
    %103 = tpu.matmul %102, %88, %cst_31 {dimension_numbers = #tpu.dot_dimension_numbers<[2], [1], [1], [2], [0, 0, 0, 1, 1, 2], [0], [0]>} : vector<8x8x8xbf16>, vector<8x8x8xbf16>, vector<8x8x8xf32> -> vector<8x8x8xf32>
    "tpu.trace_stop"() : () -> ()
    %104 = vector.extract_strided_slice %103 {offsets = [0, 0, 0], sizes = [2, 8, 8], strides = [1, 1, 1]} : vector<8x8x8xf32> to vector<2x8x8xf32>
    %105 = vector.shape_cast %104 : vector<2x8x8xf32> to vector<16x8xf32>
    %106 = vector.extract_strided_slice %103 {offsets = [2, 0, 0], sizes = [2, 8, 8], strides = [1, 1, 1]} : vector<8x8x8xf32> to vector<2x8x8xf32>
    %107 = vector.shape_cast %106 : vector<2x8x8xf32> to vector<16x8xf32>
    %108 = vector.extract_strided_slice %103 {offsets = [4, 0, 0], sizes = [2, 8, 8], strides = [1, 1, 1]} : vector<8x8x8xf32> to vector<2x8x8xf32>
    %109 = vector.shape_cast %108 : vector<2x8x8xf32> to vector<16x8xf32>
    %110 = vector.extract_strided_slice %103 {offsets = [6, 0, 0], sizes = [2, 8, 8], strides = [1, 1, 1]} : vector<8x8x8xf32> to vector<2x8x8xf32>
    %111 = vector.shape_cast %110 : vector<2x8x8xf32> to vector<16x8xf32>
    %112 = tpu.concatenate %105, %107, %109, %111 in 1 : vector<16x8xf32>, vector<16x8xf32>, vector<16x8xf32>, vector<16x8xf32> -> vector<16x32xf32>
    %113 = arith.truncf %112 : vector<16x32xf32> to vector<16x32xbf16>
    %c0_32 = arith.constant 0 : index
    %c0_33 = arith.constant 0 : index
    %c0_34 = arith.constant 0 : index
    %114 = vector.load %arg7[%c0_32, %c0_33, %c0_34] : memref<2x32x32xbf16, #tpu.memory_space<vmem>>, vector<1x32x32xbf16>
    %115 = vector.shape_cast %114 : vector<1x32x32xbf16> to vector<32x32xbf16>
    %cst_35 = arith.constant dense<0.000000e+00> : vector<16x32xf32>
    %116 = tpu.matmul %113, %115, %cst_35 {dimension_numbers = #tpu.dot_dimension_numbers<[1], [0], [0], [1], [0, 0, 1, 1], [], []>} : vector<16x32xbf16>, vector<32x32xbf16>, vector<16x32xf32> -> vector<16x32xf32>
    %c3 = arith.constant 3 : index
    %c0_36 = arith.constant 0 : index
    %117 = vector.load %arg5[%c3, %c0_36] : memref<24x128xf32, #tpu.memory_space<vmem>>, vector<1x32xf32>
    %118 = vector.broadcast %117 : vector<1x32xf32> to vector<16x32xf32>
    %119 = arith.addf %116, %118 : vector<16x32xf32>
    %120 = arith.addf %119, %47 : vector<16x32xf32>
    %c4 = arith.constant 4 : index
    %c0_37 = arith.constant 0 : index
    %121 = vector.load %arg5[%c4, %c0_37] : memref<24x128xf32, #tpu.memory_space<vmem>>, vector<1x32xf32>
    %c5 = arith.constant 5 : index
    %c0_38 = arith.constant 0 : index
    %122 = vector.load %arg5[%c5, %c0_38] : memref<24x128xf32, #tpu.memory_space<vmem>>, vector<1x32xf32>
    %cst_39 = arith.constant dense<0.000000e+00> : vector<16xf32>
    %123 = vector.multi_reduction <add>, %120, %cst_39 [1] : vector<16x32xf32> to vector<16xf32>
    %124 = vector.shape_cast %123 : vector<16xf32> to vector<16x1xf32>
    %cst_40 = arith.constant 3.200000e+01 : f32
    %125 = vector.broadcast %cst_40 : f32 to vector<16x1xf32>
    %126 = arith.divf %124, %125 : vector<16x1xf32>
    %127 = vector.broadcast %126 : vector<16x1xf32> to vector<16x32xf32>
    %128 = arith.subf %120, %127 : vector<16x32xf32>
    %129 = arith.mulf %128, %128 : vector<16x32xf32>
    %cst_41 = arith.constant dense<0.000000e+00> : vector<16xf32>
    %130 = vector.multi_reduction <add>, %129, %cst_41 [1] : vector<16x32xf32> to vector<16xf32>
    %131 = vector.shape_cast %130 : vector<16xf32> to vector<16x1xf32>
    %cst_42 = arith.constant 3.200000e+01 : f32
    %132 = vector.broadcast %cst_42 : f32 to vector<16x1xf32>
    %133 = arith.divf %131, %132 : vector<16x1xf32>
    %134 = vector.broadcast %126 : vector<16x1xf32> to vector<16x32xf32>
    %135 = arith.subf %120, %134 : vector<16x32xf32>
    %cst_43 = arith.constant 9.99999996E-13 : f32
    %136 = vector.broadcast %cst_43 : f32 to vector<16x1xf32>
    %137 = arith.addf %133, %136 : vector<16x1xf32>
    %138 = math.rsqrt %137 : vector<16x1xf32>
    %139 = vector.broadcast %138 : vector<16x1xf32> to vector<16x32xf32>
    %140 = arith.mulf %135, %139 : vector<16x32xf32>
    %141 = vector.broadcast %121 : vector<1x32xf32> to vector<16x32xf32>
    %142 = arith.mulf %140, %141 : vector<16x32xf32>
    %143 = vector.broadcast %122 : vector<1x32xf32> to vector<16x32xf32>
    %144 = arith.addf %142, %143 : vector<16x32xf32>
    %145 = arith.truncf %144 : vector<16x32xf32> to vector<16x32xbf16>
    %c0_44 = arith.constant 0 : index
    %c0_45 = arith.constant 0 : index
    %c0_46 = arith.constant 0 : index
    %146 = vector.load %arg8[%c0_44, %c0_45, %c0_46] : memref<2x32x64xbf16, #tpu.memory_space<vmem>>, vector<1x32x64xbf16>
    %147 = vector.shape_cast %146 : vector<1x32x64xbf16> to vector<32x64xbf16>
    %cst_47 = arith.constant dense<0.000000e+00> : vector<16x64xf32>
    %148 = tpu.matmul %145, %147, %cst_47 {dimension_numbers = #tpu.dot_dimension_numbers<[1], [0], [0], [1], [0, 0, 1, 1], [], []>} : vector<16x32xbf16>, vector<32x64xbf16>, vector<16x64xf32> -> vector<16x64xf32>
    %c6 = arith.constant 6 : index
    %c0_48 = arith.constant 0 : index
    %149 = vector.load %arg5[%c6, %c0_48] : memref<24x128xf32, #tpu.memory_space<vmem>>, vector<1x64xf32>
    %150 = vector.broadcast %149 : vector<1x64xf32> to vector<16x64xf32>
    %151 = arith.addf %148, %150 : vector<16x64xf32>
    %cst_49 = arith.constant 5.000000e-01 : f32
    %152 = vector.broadcast %cst_49 : f32 to vector<16x64xf32>
    %153 = arith.mulf %152, %151 : vector<16x64xf32>
    %cst_50 = arith.constant 4.471500e-02 : f32
    %154 = vector.broadcast %cst_50 : f32 to vector<16x64xf32>
    %155 = arith.mulf %154, %151 : vector<16x64xf32>
    %156 = arith.mulf %155, %151 : vector<16x64xf32>
    %157 = arith.mulf %156, %151 : vector<16x64xf32>
    %158 = arith.addf %151, %157 : vector<16x64xf32>
    %cst_51 = arith.constant 0.797884583 : f32
    %159 = vector.broadcast %cst_51 : f32 to vector<16x64xf32>
    %160 = arith.mulf %159, %158 : vector<16x64xf32>
    %161 = math.tanh %160 : vector<16x64xf32>
    %cst_52 = arith.constant 1.000000e+00 : f32
    %162 = vector.broadcast %cst_52 : f32 to vector<16x64xf32>
    %163 = arith.addf %162, %161 : vector<16x64xf32>
    %164 = arith.mulf %153, %163 : vector<16x64xf32>
    %165 = arith.truncf %164 : vector<16x64xf32> to vector<16x64xbf16>
    %c0_53 = arith.constant 0 : index
    %c0_54 = arith.constant 0 : index
    %c0_55 = arith.constant 0 : index
    %166 = vector.load %arg9[%c0_53, %c0_54, %c0_55] : memref<2x64x32xbf16, #tpu.memory_space<vmem>>, vector<1x64x32xbf16>
    %167 = vector.shape_cast %166 : vector<1x64x32xbf16> to vector<64x32xbf16>
    %cst_56 = arith.constant dense<0.000000e+00> : vector<16x32xf32>
    %168 = tpu.matmul %165, %167, %cst_56 {dimension_numbers = #tpu.dot_dimension_numbers<[1], [0], [0], [1], [0, 0, 1, 1], [], []>} : vector<16x64xbf16>, vector<64x32xbf16>, vector<16x32xf32> -> vector<16x32xf32>
    %c7 = arith.constant 7 : index
    %c0_57 = arith.constant 0 : index
    %169 = vector.load %arg5[%c7, %c0_57] : memref<24x128xf32, #tpu.memory_space<vmem>>, vector<1x32xf32>
    %170 = vector.broadcast %169 : vector<1x32xf32> to vector<16x32xf32>
    %171 = arith.addf %168, %170 : vector<16x32xf32>
    %172 = arith.addf %171, %144 : vector<16x32xf32>
    %c8 = arith.constant 8 : index
    %c0_58 = arith.constant 0 : index
    %173 = vector.load %arg5[%c8, %c0_58] : memref<24x128xf32, #tpu.memory_space<vmem>>, vector<1x32xf32>
    %c9 = arith.constant 9 : index
    %c0_59 = arith.constant 0 : index
    %174 = vector.load %arg5[%c9, %c0_59] : memref<24x128xf32, #tpu.memory_space<vmem>>, vector<1x32xf32>
    %cst_60 = arith.constant dense<0.000000e+00> : vector<16xf32>
    %175 = vector.multi_reduction <add>, %172, %cst_60 [1] : vector<16x32xf32> to vector<16xf32>
    %176 = vector.shape_cast %175 : vector<16xf32> to vector<16x1xf32>
    %cst_61 = arith.constant 3.200000e+01 : f32
    %177 = vector.broadcast %cst_61 : f32 to vector<16x1xf32>
    %178 = arith.divf %176, %177 : vector<16x1xf32>
    %179 = vector.broadcast %178 : vector<16x1xf32> to vector<16x32xf32>
    %180 = arith.subf %172, %179 : vector<16x32xf32>
    %181 = arith.mulf %180, %180 : vector<16x32xf32>
    %cst_62 = arith.constant dense<0.000000e+00> : vector<16xf32>
    %182 = vector.multi_reduction <add>, %181, %cst_62 [1] : vector<16x32xf32> to vector<16xf32>
    %183 = vector.shape_cast %182 : vector<16xf32> to vector<16x1xf32>
    %cst_63 = arith.constant 3.200000e+01 : f32
    %184 = vector.broadcast %cst_63 : f32 to vector<16x1xf32>
    %185 = arith.divf %183, %184 : vector<16x1xf32>
    %186 = vector.broadcast %178 : vector<16x1xf32> to vector<16x32xf32>
    %187 = arith.subf %172, %186 : vector<16x32xf32>
    %cst_64 = arith.constant 9.99999996E-13 : f32
    %188 = vector.broadcast %cst_64 : f32 to vector<16x1xf32>
    %189 = arith.addf %185, %188 : vector<16x1xf32>
    %190 = math.rsqrt %189 : vector<16x1xf32>
    %191 = vector.broadcast %190 : vector<16x1xf32> to vector<16x32xf32>
    %192 = arith.mulf %187, %191 : vector<16x32xf32>
    %193 = vector.broadcast %173 : vector<1x32xf32> to vector<16x32xf32>
    %194 = arith.mulf %192, %193 : vector<16x32xf32>
    %195 = vector.broadcast %174 : vector<1x32xf32> to vector<16x32xf32>
    %196 = arith.addf %194, %195 : vector<16x32xf32>
    %197 = arith.truncf %196 : vector<16x32xf32> to vector<16x32xbf16>
    %c1_65 = arith.constant 1 : index
    %c0_66 = arith.constant 0 : index
    %c0_67 = arith.constant 0 : index
    %198 = vector.load %arg6[%c1_65, %c0_66, %c0_67] : memref<2x32x96xbf16, #tpu.memory_space<vmem>>, vector<1x32x96xbf16>
    %199 = vector.shape_cast %198 : vector<1x32x96xbf16> to vector<32x96xbf16>
    %cst_68 = arith.constant dense<0.000000e+00> : vector<16x96xf32>
    %200 = tpu.matmul %197, %199, %cst_68 {dimension_numbers = #tpu.dot_dimension_numbers<[1], [0], [0], [1], [0, 0, 1, 1], [], []>} : vector<16x32xbf16>, vector<32x96xbf16>, vector<16x96xf32> -> vector<16x96xf32>
    %c10 = arith.constant 10 : index
    %c0_69 = arith.constant 0 : index
    %201 = vector.load %arg5[%c10, %c0_69] : memref<24x128xf32, #tpu.memory_space<vmem>>, vector<1x96xf32>
    %202 = vector.broadcast %201 : vector<1x96xf32> to vector<16x96xf32>
    %203 = arith.addf %200, %202 : vector<16x96xf32>
    %204 = arith.truncf %203 : vector<16x96xf32> to vector<16x96xbf16>
    %205 = vector.extract_strided_slice %204 {offsets = [0, 0], sizes = [16, 8], strides = [1, 1]} : vector<16x96xbf16> to vector<16x8xbf16>
    %206 = vector.shape_cast %205 : vector<16x8xbf16> to vector<2x8x8xbf16>
    %207 = vector.extract_strided_slice %204 {offsets = [0, 8], sizes = [16, 8], strides = [1, 1]} : vector<16x96xbf16> to vector<16x8xbf16>
    %208 = vector.shape_cast %207 : vector<16x8xbf16> to vector<2x8x8xbf16>
    %209 = vector.extract_strided_slice %204 {offsets = [0, 16], sizes = [16, 8], strides = [1, 1]} : vector<16x96xbf16> to vector<16x8xbf16>
    %210 = vector.shape_cast %209 : vector<16x8xbf16> to vector<2x8x8xbf16>
    %211 = vector.extract_strided_slice %204 {offsets = [0, 24], sizes = [16, 8], strides = [1, 1]} : vector<16x96xbf16> to vector<16x8xbf16>
    %212 = vector.shape_cast %211 : vector<16x8xbf16> to vector<2x8x8xbf16>
    %213 = tpu.concatenate %206, %208, %210, %212 in 0 : vector<2x8x8xbf16>, vector<2x8x8xbf16>, vector<2x8x8xbf16>, vector<2x8x8xbf16> -> vector<8x8x8xbf16>
    %214 = vector.extract_strided_slice %204 {offsets = [0, 32], sizes = [16, 8], strides = [1, 1]} : vector<16x96xbf16> to vector<16x8xbf16>
    %215 = vector.shape_cast %214 : vector<16x8xbf16> to vector<2x8x8xbf16>
    %216 = vector.extract_strided_slice %204 {offsets = [0, 40], sizes = [16, 8], strides = [1, 1]} : vector<16x96xbf16> to vector<16x8xbf16>
    %217 = vector.shape_cast %216 : vector<16x8xbf16> to vector<2x8x8xbf16>
    %218 = vector.extract_strided_slice %204 {offsets = [0, 48], sizes = [16, 8], strides = [1, 1]} : vector<16x96xbf16> to vector<16x8xbf16>
    %219 = vector.shape_cast %218 : vector<16x8xbf16> to vector<2x8x8xbf16>
    %220 = vector.extract_strided_slice %204 {offsets = [0, 56], sizes = [16, 8], strides = [1, 1]} : vector<16x96xbf16> to vector<16x8xbf16>
    %221 = vector.shape_cast %220 : vector<16x8xbf16> to vector<2x8x8xbf16>
    %222 = tpu.concatenate %215, %217, %219, %221 in 0 : vector<2x8x8xbf16>, vector<2x8x8xbf16>, vector<2x8x8xbf16>, vector<2x8x8xbf16> -> vector<8x8x8xbf16>
    %223 = vector.extract_strided_slice %204 {offsets = [0, 64], sizes = [16, 8], strides = [1, 1]} : vector<16x96xbf16> to vector<16x8xbf16>
    %224 = vector.shape_cast %223 : vector<16x8xbf16> to vector<2x8x8xbf16>
    %225 = vector.extract_strided_slice %204 {offsets = [0, 72], sizes = [16, 8], strides = [1, 1]} : vector<16x96xbf16> to vector<16x8xbf16>
    %226 = vector.shape_cast %225 : vector<16x8xbf16> to vector<2x8x8xbf16>
    %227 = vector.extract_strided_slice %204 {offsets = [0, 80], sizes = [16, 8], strides = [1, 1]} : vector<16x96xbf16> to vector<16x8xbf16>
    %228 = vector.shape_cast %227 : vector<16x8xbf16> to vector<2x8x8xbf16>
    %229 = vector.extract_strided_slice %204 {offsets = [0, 88], sizes = [16, 8], strides = [1, 1]} : vector<16x96xbf16> to vector<16x8xbf16>
    %230 = vector.shape_cast %229 : vector<16x8xbf16> to vector<2x8x8xbf16>
    %231 = tpu.concatenate %224, %226, %228, %230 in 0 : vector<2x8x8xbf16>, vector<2x8x8xbf16>, vector<2x8x8xbf16>, vector<2x8x8xbf16> -> vector<8x8x8xbf16>
    "tpu.trace_start"() <{level = 10 : i32, message = "zqd,zkd->zqk"}> : () -> ()
    %cst_70 = arith.constant dense<0.000000e+00> : vector<8x8x8xf32>
    %232 = tpu.matmul %213, %222, %cst_70 {dimension_numbers = #tpu.dot_dimension_numbers<[2], [2], [1], [1], [0, 0, 0, 1, 1, 1], [0], [0]>} : vector<8x8x8xbf16>, vector<8x8x8xbf16>, vector<8x8x8xf32> -> vector<8x8x8xf32>
    "tpu.trace_stop"() : () -> ()
    %233 = vector.broadcast %53 : vector<8x1x8xf32> to vector<8x8x8xf32>
    %234 = arith.addf %232, %233 : vector<8x8x8xf32>
    %cst_71 = arith.constant dense<0xFF800000> : vector<8x8xf32>
    %235 = vector.multi_reduction <maximumf>, %234, %cst_71 [2] : vector<8x8x8xf32> to vector<8x8xf32>
    %236 = vector.shape_cast %235 : vector<8x8xf32> to vector<8x8x1xf32>
    %237 = vector.broadcast %236 : vector<8x8x1xf32> to vector<8x8x8xf32>
    %238 = arith.subf %234, %237 : vector<8x8x8xf32>
    %239 = math.exp %238 : vector<8x8x8xf32>
    %cst_72 = arith.constant dense<0.000000e+00> : vector<8x8xf32>
    %240 = vector.multi_reduction <add>, %239, %cst_72 [2] : vector<8x8x8xf32> to vector<8x8xf32>
    %241 = vector.shape_cast %240 : vector<8x8xf32> to vector<8x8x1xf32>
    %242 = tpu.reciprocal %241 {approx = true} : vector<8x8x1xf32> -> vector<8x8x1xf32>
    %243 = vector.broadcast %242 : vector<8x8x1xf32> to vector<8x8x8xf32>
    %244 = arith.mulf %239, %243 : vector<8x8x8xf32>
    %245 = arith.truncf %244 : vector<8x8x8xf32> to vector<8x8x8xbf16>
    "tpu.trace_start"() <{level = 10 : i32, message = "zqk,zkd->zqd"}> : () -> ()
    %cst_73 = arith.constant dense<0.000000e+00> : vector<8x8x8xf32>
    %246 = tpu.matmul %245, %231, %cst_73 {dimension_numbers = #tpu.dot_dimension_numbers<[2], [1], [1], [2], [0, 0, 0, 1, 1, 2], [0], [0]>} : vector<8x8x8xbf16>, vector<8x8x8xbf16>, vector<8x8x8xf32> -> vector<8x8x8xf32>
    "tpu.trace_stop"() : () -> ()
    %247 = vector.extract_strided_slice %246 {offsets = [0, 0, 0], sizes = [2, 8, 8], strides = [1, 1, 1]} : vector<8x8x8xf32> to vector<2x8x8xf32>
    %248 = vector.shape_cast %247 : vector<2x8x8xf32> to vector<16x8xf32>
    %249 = vector.extract_strided_slice %246 {offsets = [2, 0, 0], sizes = [2, 8, 8], strides = [1, 1, 1]} : vector<8x8x8xf32> to vector<2x8x8xf32>
    %250 = vector.shape_cast %249 : vector<2x8x8xf32> to vector<16x8xf32>
    %251 = vector.extract_strided_slice %246 {offsets = [4, 0, 0], sizes = [2, 8, 8], strides = [1, 1, 1]} : vector<8x8x8xf32> to vector<2x8x8xf32>
    %252 = vector.shape_cast %251 : vector<2x8x8xf32> to vector<16x8xf32>
    %253 = vector.extract_strided_slice %246 {offsets = [6, 0, 0], sizes = [2, 8, 8], strides = [1, 1, 1]} : vector<8x8x8xf32> to vector<2x8x8xf32>
    %254 = vector.shape_cast %253 : vector<2x8x8xf32> to vector<16x8xf32>
    %255 = tpu.concatenate %248, %250, %252, %254 in 1 : vector<16x8xf32>, vector<16x8xf32>, vector<16x8xf32>, vector<16x8xf32> -> vector<16x32xf32>
    %256 = arith.truncf %255 : vector<16x32xf32> to vector<16x32xbf16>
    %c1_74 = arith.constant 1 : index
    %c0_75 = arith.constant 0 : index
    %c0_76 = arith.constant 0 : index
    %257 = vector.load %arg7[%c1_74, %c0_75, %c0_76] : memref<2x32x32xbf16, #tpu.memory_space<vmem>>, vector<1x32x32xbf16>
    %258 = vector.shape_cast %257 : vector<1x32x32xbf16> to vector<32x32xbf16>
    %cst_77 = arith.constant dense<0.000000e+00> : vector<16x32xf32>
    %259 = tpu.matmul %256, %258, %cst_77 {dimension_numbers = #tpu.dot_dimension_numbers<[1], [0], [0], [1], [0, 0, 1, 1], [], []>} : vector<16x32xbf16>, vector<32x32xbf16>, vector<16x32xf32> -> vector<16x32xf32>
    %c11 = arith.constant 11 : index
    %c0_78 = arith.constant 0 : index
    %260 = vector.load %arg5[%c11, %c0_78] : memref<24x128xf32, #tpu.memory_space<vmem>>, vector<1x32xf32>
    %261 = vector.broadcast %260 : vector<1x32xf32> to vector<16x32xf32>
    %262 = arith.addf %259, %261 : vector<16x32xf32>
    %263 = arith.addf %262, %196 : vector<16x32xf32>
    %c12 = arith.constant 12 : index
    %c0_79 = arith.constant 0 : index
    %264 = vector.load %arg5[%c12, %c0_79] : memref<24x128xf32, #tpu.memory_space<vmem>>, vector<1x32xf32>
    %c13 = arith.constant 13 : index
    %c0_80 = arith.constant 0 : index
    %265 = vector.load %arg5[%c13, %c0_80] : memref<24x128xf32, #tpu.memory_space<vmem>>, vector<1x32xf32>
    %cst_81 = arith.constant dense<0.000000e+00> : vector<16xf32>
    %266 = vector.multi_reduction <add>, %263, %cst_81 [1] : vector<16x32xf32> to vector<16xf32>
    %267 = vector.shape_cast %266 : vector<16xf32> to vector<16x1xf32>
    %cst_82 = arith.constant 3.200000e+01 : f32
    %268 = vector.broadcast %cst_82 : f32 to vector<16x1xf32>
    %269 = arith.divf %267, %268 : vector<16x1xf32>
    %270 = vector.broadcast %269 : vector<16x1xf32> to vector<16x32xf32>
    %271 = arith.subf %263, %270 : vector<16x32xf32>
    %272 = arith.mulf %271, %271 : vector<16x32xf32>
    %cst_83 = arith.constant dense<0.000000e+00> : vector<16xf32>
    %273 = vector.multi_reduction <add>, %272, %cst_83 [1] : vector<16x32xf32> to vector<16xf32>
    %274 = vector.shape_cast %273 : vector<16xf32> to vector<16x1xf32>
    %cst_84 = arith.constant 3.200000e+01 : f32
    %275 = vector.broadcast %cst_84 : f32 to vector<16x1xf32>
    %276 = arith.divf %274, %275 : vector<16x1xf32>
    %277 = vector.broadcast %269 : vector<16x1xf32> to vector<16x32xf32>
    %278 = arith.subf %263, %277 : vector<16x32xf32>
    %cst_85 = arith.constant 9.99999996E-13 : f32
    %279 = vector.broadcast %cst_85 : f32 to vector<16x1xf32>
    %280 = arith.addf %276, %279 : vector<16x1xf32>
    %281 = math.rsqrt %280 : vector<16x1xf32>
    %282 = vector.broadcast %281 : vector<16x1xf32> to vector<16x32xf32>
    %283 = arith.mulf %278, %282 : vector<16x32xf32>
    %284 = vector.broadcast %264 : vector<1x32xf32> to vector<16x32xf32>
    %285 = arith.mulf %283, %284 : vector<16x32xf32>
    %286 = vector.broadcast %265 : vector<1x32xf32> to vector<16x32xf32>
    %287 = arith.addf %285, %286 : vector<16x32xf32>
    %288 = arith.truncf %287 : vector<16x32xf32> to vector<16x32xbf16>
    %c1_86 = arith.constant 1 : index
    %c0_87 = arith.constant 0 : index
    %c0_88 = arith.constant 0 : index
    %289 = vector.load %arg8[%c1_86, %c0_87, %c0_88] : memref<2x32x64xbf16, #tpu.memory_space<vmem>>, vector<1x32x64xbf16>
    %290 = vector.shape_cast %289 : vector<1x32x64xbf16> to vector<32x64xbf16>
    %cst_89 = arith.constant dense<0.000000e+00> : vector<16x64xf32>
    %291 = tpu.matmul %288, %290, %cst_89 {dimension_numbers = #tpu.dot_dimension_numbers<[1], [0], [0], [1], [0, 0, 1, 1], [], []>} : vector<16x32xbf16>, vector<32x64xbf16>, vector<16x64xf32> -> vector<16x64xf32>
    %c14 = arith.constant 14 : index
    %c0_90 = arith.constant 0 : index
    %292 = vector.load %arg5[%c14, %c0_90] : memref<24x128xf32, #tpu.memory_space<vmem>>, vector<1x64xf32>
    %293 = vector.broadcast %292 : vector<1x64xf32> to vector<16x64xf32>
    %294 = arith.addf %291, %293 : vector<16x64xf32>
    %cst_91 = arith.constant 5.000000e-01 : f32
    %295 = vector.broadcast %cst_91 : f32 to vector<16x64xf32>
    %296 = arith.mulf %295, %294 : vector<16x64xf32>
    %cst_92 = arith.constant 4.471500e-02 : f32
    %297 = vector.broadcast %cst_92 : f32 to vector<16x64xf32>
    %298 = arith.mulf %297, %294 : vector<16x64xf32>
    %299 = arith.mulf %298, %294 : vector<16x64xf32>
    %300 = arith.mulf %299, %294 : vector<16x64xf32>
    %301 = arith.addf %294, %300 : vector<16x64xf32>
    %cst_93 = arith.constant 0.797884583 : f32
    %302 = vector.broadcast %cst_93 : f32 to vector<16x64xf32>
    %303 = arith.mulf %302, %301 : vector<16x64xf32>
    %304 = math.tanh %303 : vector<16x64xf32>
    %cst_94 = arith.constant 1.000000e+00 : f32
    %305 = vector.broadcast %cst_94 : f32 to vector<16x64xf32>
    %306 = arith.addf %305, %304 : vector<16x64xf32>
    %307 = arith.mulf %296, %306 : vector<16x64xf32>
    %308 = arith.truncf %307 : vector<16x64xf32> to vector<16x64xbf16>
    %c1_95 = arith.constant 1 : index
    %c0_96 = arith.constant 0 : index
    %c0_97 = arith.constant 0 : index
    %309 = vector.load %arg9[%c1_95, %c0_96, %c0_97] : memref<2x64x32xbf16, #tpu.memory_space<vmem>>, vector<1x64x32xbf16>
    %310 = vector.shape_cast %309 : vector<1x64x32xbf16> to vector<64x32xbf16>
    %cst_98 = arith.constant dense<0.000000e+00> : vector<16x32xf32>
    %311 = tpu.matmul %308, %310, %cst_98 {dimension_numbers = #tpu.dot_dimension_numbers<[1], [0], [0], [1], [0, 0, 1, 1], [], []>} : vector<16x64xbf16>, vector<64x32xbf16>, vector<16x32xf32> -> vector<16x32xf32>
    %c15 = arith.constant 15 : index
    %c0_99 = arith.constant 0 : index
    %312 = vector.load %arg5[%c15, %c0_99] : memref<24x128xf32, #tpu.memory_space<vmem>>, vector<1x32xf32>
    %313 = vector.broadcast %312 : vector<1x32xf32> to vector<16x32xf32>
    %314 = arith.addf %311, %313 : vector<16x32xf32>
    %315 = arith.addf %314, %287 : vector<16x32xf32>
    %c16 = arith.constant 16 : index
    %c0_100 = arith.constant 0 : index
    %316 = vector.load %arg5[%c16, %c0_100] : memref<24x128xf32, #tpu.memory_space<vmem>>, vector<1x32xf32>
    %c17 = arith.constant 17 : index
    %c0_101 = arith.constant 0 : index
    %317 = vector.load %arg5[%c17, %c0_101] : memref<24x128xf32, #tpu.memory_space<vmem>>, vector<1x32xf32>
    %cst_102 = arith.constant dense<0.000000e+00> : vector<16xf32>
    %318 = vector.multi_reduction <add>, %315, %cst_102 [1] : vector<16x32xf32> to vector<16xf32>
    %319 = vector.shape_cast %318 : vector<16xf32> to vector<16x1xf32>
    %cst_103 = arith.constant 3.200000e+01 : f32
    %320 = vector.broadcast %cst_103 : f32 to vector<16x1xf32>
    %321 = arith.divf %319, %320 : vector<16x1xf32>
    %322 = vector.broadcast %321 : vector<16x1xf32> to vector<16x32xf32>
    %323 = arith.subf %315, %322 : vector<16x32xf32>
    %324 = arith.mulf %323, %323 : vector<16x32xf32>
    %cst_104 = arith.constant dense<0.000000e+00> : vector<16xf32>
    %325 = vector.multi_reduction <add>, %324, %cst_104 [1] : vector<16x32xf32> to vector<16xf32>
    %326 = vector.shape_cast %325 : vector<16xf32> to vector<16x1xf32>
    %cst_105 = arith.constant 3.200000e+01 : f32
    %327 = vector.broadcast %cst_105 : f32 to vector<16x1xf32>
    %328 = arith.divf %326, %327 : vector<16x1xf32>
    %329 = vector.broadcast %321 : vector<16x1xf32> to vector<16x32xf32>
    %330 = arith.subf %315, %329 : vector<16x32xf32>
    %cst_106 = arith.constant 9.99999996E-13 : f32
    %331 = vector.broadcast %cst_106 : f32 to vector<16x1xf32>
    %332 = arith.addf %328, %331 : vector<16x1xf32>
    %333 = math.rsqrt %332 : vector<16x1xf32>
    %334 = vector.broadcast %333 : vector<16x1xf32> to vector<16x32xf32>
    %335 = arith.mulf %330, %334 : vector<16x32xf32>
    %336 = vector.broadcast %316 : vector<1x32xf32> to vector<16x32xf32>
    %337 = arith.mulf %335, %336 : vector<16x32xf32>
    %338 = vector.broadcast %317 : vector<1x32xf32> to vector<16x32xf32>
    %339 = arith.addf %337, %338 : vector<16x32xf32>
    %340 = arith.truncf %339 : vector<16x32xf32> to vector<16x32xbf16>
    %c0_107 = arith.constant 0 : index
    %c0_108 = arith.constant 0 : index
    %341 = vector.load %arg10[%c0_107, %c0_108] : memref<32x3xbf16, #tpu.memory_space<vmem>>, vector<32x3xbf16>
    %cst_109 = arith.constant dense<0.000000e+00> : vector<16x3xf32>
    %342 = tpu.matmul %340, %341, %cst_109 {dimension_numbers = #tpu.dot_dimension_numbers<[1], [0], [0], [1], [0, 0, 1, 1], [], []>} : vector<16x32xbf16>, vector<32x3xbf16>, vector<16x3xf32> -> vector<16x3xf32>
    %c18 = arith.constant 18 : index
    %c0_110 = arith.constant 0 : index
    %343 = vector.load %arg5[%c18, %c0_110] : memref<24x128xf32, #tpu.memory_space<vmem>>, vector<1x3xf32>
    %344 = vector.broadcast %343 : vector<1x3xf32> to vector<16x3xf32>
    %345 = arith.addf %342, %344 : vector<16x3xf32>
    %cst_111 = arith.constant dense<0xFF800000> : vector<16xf32>
    %346 = vector.multi_reduction <maximumf>, %345, %cst_111 [1] : vector<16x3xf32> to vector<16xf32>
    %347 = vector.shape_cast %346 : vector<16xf32> to vector<16x1xf32>
    %348 = vector.broadcast %347 : vector<16x1xf32> to vector<16x3xf32>
    %349 = arith.subf %345, %348 : vector<16x3xf32>
    %350 = math.exp %349 : vector<16x3xf32>
    %cst_112 = arith.constant dense<0.000000e+00> : vector<16xf32>
    %351 = vector.multi_reduction <add>, %350, %cst_112 [1] : vector<16x3xf32> to vector<16xf32>
    %352 = vector.shape_cast %351 : vector<16xf32> to vector<16x1xf32>
    %353 = vector.broadcast %352 : vector<16x1xf32> to vector<16x3xf32>
    %354 = arith.divf %350, %353 : vector<16x3xf32>
    %355 = vector.shape_cast %354 : vector<16x3xf32> to vector<2x8x3xf32>
    %c0_113 = arith.constant 0 : index
    %c0_114 = arith.constant 0 : index
    %c0_115 = arith.constant 0 : index
    %356 = vector.load %arg11[%c0_113, %c0_114, %c0_115] : memref<2x8x3xf32, #tpu.memory_space<vmem>>, vector<2x8x3xf32>
    tpu.vector_store %arg11[%c0_113, %c0_114, %c0_115], %355 {strides = array<i32>} : memref<2x8x3xf32, #tpu.memory_space<vmem>>, vector<2x8x3xf32>,
    %357 = tpu.concatenate %47, %196, %339 in 1 : vector<16x32xf32>, vector<16x32xf32>, vector<16x32xf32> -> vector<16x96xf32>
    %358 = vector.shape_cast %357 : vector<16x96xf32> to vector<2x8x96xf32>
    %c0_116 = arith.constant 0 : index
    %c0_117 = arith.constant 0 : index
    %c0_118 = arith.constant 0 : index
    %359 = vector.load %arg12[%c0_116, %c0_117, %c0_118] : memref<2x8x96xf32, #tpu.memory_space<vmem>>, vector<2x8x96xf32>
    tpu.vector_store %arg12[%c0_116, %c0_117, %c0_118], %358 {strides = array<i32>} : memref<2x8x96xf32, #tpu.memory_space<vmem>>, vector<2x8x96xf32>,
    return
  }
  func.func @transform_0(%arg0: i32) -> (i32, i32, i32) {
    %c0_i32 = arith.constant 0 : i32
    %c0_i32_0 = arith.constant 0 : i32
    %c0_i32_1 = arith.constant 0 : i32
    return %arg0, %c0_i32, %c0_i32_0 : i32, i32, i32
  }
  func.func @transform_1(%arg0: i32) -> (i32, i32, i32) {
    %c0_i32 = arith.constant 0 : i32
    %c0_i32_0 = arith.constant 0 : i32
    %c0_i32_1 = arith.constant 0 : i32
    return %arg0, %c0_i32, %c0_i32_0 : i32, i32, i32
  }
  func.func @transform_2(%arg0: i32) -> (i32, i32, i32) {
    %c0_i32 = arith.constant 0 : i32
    %c0_i32_0 = arith.constant 0 : i32
    %c0_i32_1 = arith.constant 0 : i32
    return %arg0, %c0_i32, %c0_i32_0 : i32, i32, i32
  }
  func.func @transform_3(%arg0: i32) -> (i32, i32) {
    %c0_i32 = arith.constant 0 : i32
    %c0_i32_0 = arith.constant 0 : i32
    %c0_i32_1 = arith.constant 0 : i32
    return %c0_i32, %c0_i32_0 : i32, i32
  }
  func.func @transform_4(%arg0: i32) -> (i32, i32) {
    %c0_i32 = arith.constant 0 : i32
    %c0_i32_0 = arith.constant 0 : i32
    %c0_i32_1 = arith.constant 0 : i32
    return %c0_i32, %c0_i32_0 : i32, i32
  }
  func.func @transform_5(%arg0: i32) -> (i32, i32, i32) {
    %c0_i32 = arith.constant 0 : i32
    %c0_i32_0 = arith.constant 0 : i32
    %c0_i32_1 = arith.constant 0 : i32
    %c0_i32_2 = arith.constant 0 : i32
    return %c0_i32, %c0_i32_0, %c0_i32_1 : i32, i32, i32
  }
  func.func @transform_6(%arg0: i32) -> (i32, i32, i32) {
    %c0_i32 = arith.constant 0 : i32
    %c0_i32_0 = arith.constant 0 : i32
    %c0_i32_1 = arith.constant 0 : i32
    %c0_i32_2 = arith.constant 0 : i32
    return %c0_i32, %c0_i32_0, %c0_i32_1 : i32, i32, i32
  }
  func.func @transform_7(%arg0: i32) -> (i32, i32, i32) {
    %c0_i32 = arith.constant 0 : i32
    %c0_i32_0 = arith.constant 0 : i32
    %c0_i32_1 = arith.constant 0 : i32
    %c0_i32_2 = arith.constant 0 : i32
    return %c0_i32, %c0_i32_0, %c0_i32_1 : i32, i32, i32
  }
  func.func @transform_8(%arg0: i32) -> (i32, i32, i32) {
    %c0_i32 = arith.constant 0 : i32
    %c0_i32_0 = arith.constant 0 : i32
    %c0_i32_1 = arith.constant 0 : i32
    %c0_i32_2 = arith.constant 0 : i32
    return %c0_i32, %c0_i32_0, %c0_i32_1 : i32, i32, i32
  }
  func.func @transform_9(%arg0: i32) -> (i32, i32) {
    %c0_i32 = arith.constant 0 : i32
    %c0_i32_0 = arith.constant 0 : i32
    %c0_i32_1 = arith.constant 0 : i32
    return %c0_i32, %c0_i32_0 : i32, i32
  }
  func.func @transform_10(%arg0: i32) -> (i32, i32, i32) {
    %c0_i32 = arith.constant 0 : i32
    %c0_i32_0 = arith.constant 0 : i32
    %c0_i32_1 = arith.constant 0 : i32
    return %arg0, %c0_i32, %c0_i32_0 : i32, i32, i32
  }
  func.func @transform_11(%arg0: i32) -> (i32, i32, i32) {
    %c0_i32 = arith.constant 0 : i32
    %c0_i32_0 = arith.constant 0 : i32
    %c0_i32_1 = arith.constant 0 : i32
    return %arg0, %c0_i32, %c0_i32_0 : i32, i32, i32
  }
}

</mosaic_0001>

<bundles_post_ra>
// kernel: aml_forward.1
= control target key start
LH: loop header
LB: loop body
LE: loop exit
PB: predicated region body
PF: predicated region fallthrough
CT: control target
= control target key end

     0   :  { %v3666_v0 = vmov 0   ;;  %v3667_v6 = vmov 0.0   ;;  %v38_v16 = vlaneseq  ;;  %vm92_vm0 = vcmask 523264   ;;  %s3669_s15 = smov 120   ;;  %s3670_s16 = smov 112   ;;  %s4438_s0 = inlined_call_operand.vmem [shape: s32[2,8,1], index: 0, kind: input, shape index: {}]   ;;  %s4439_s3 = inlined_call_operand.vmem [shape: f32[88,32], index: 3, kind: input, shape index: {}]   ;;  %s4440_s1 = inlined_call_operand.vmem [shape: s32[2,8,1], index: 1, kind: input, shape index: {}]   ;;  %s4441_s5 = inlined_call_operand.vmem [shape: bf16[2,32,96], index: 5, kind: input, shape index: {}]   ;;  %s4442_s4 = inlined_call_operand.vmem [shape: f32[24,128], index: 4, kind: input, shape index: {}]   ;;  %s4443_s2 = inlined_call_operand.vmem [shape: f32[2,1,8], index: 2, kind: input, shape index: {}]   ;;  %s4444_s6 = inlined_call_operand.vmem [shape: bf16[2,32,32], index: 6, kind: input, shape index: {}]   ;;  %s4445_s7 = inlined_call_operand.vmem [shape: bf16[2,32,64], index: 7, kind: input, shape index: {}]   ;;  %s4446_s8 = inlined_call_operand.vmem [shape: bf16[2,64,32], index: 8, kind: input, shape index: {}]   ;;  %s4447_s9 = inlined_call_operand.vmem [shape: bf16[32,3], index: 9, kind: input, shape index: {}]   ;;  %s4448_s11 = inlined_call_operand.vmem [shape: f32[2,8,96], index: 11, kind: output, shape index: {1}]   ;;  %s4449_s10 = inlined_call_operand.vmem [shape: f32[2,8,3], index: 10, kind: output, shape index: {0}]  }
   0x1   :  { %3512 = vset.pattern.permute.xlu0 %v3666_v0  ;;  %v40_v1 = vld [vmem:[%s4438_s0] sm:$0xff]  ;;  %v61_v2 = vld [vmem:[%s4439_s3 + $0x38] sm:$0xff]  ;;  %3513 = vset.pattern.permute.xlu1 %v3666_v0  ;;  %v60_v3 = vld [vmem:[%s4439_s3 + $0x30] sm:$0xff]  ;;  %vm178_vm3 = vcmask 261120   ;;  %vm3668_vm4 = vmmov 0   ;;  %s3671_s17 = smov 104  }
   0x2   :  { %43 = vperm.xlu0 %3512, %v40_v1   ;;  %3209 = vmatprep.subr.mxu0 %v61_v2  ;;  %v41_v4 = vld [vmem:[%s4438_s0 + $0x8] sm:$0xff]  ;;  %v58_v7 = vld [vmem:[%s4439_s3 + $0x20] sm:$0xff]  ;;  %v57_v11 = vld [vmem:[%s4439_s3 + $0x18] sm:$0xff]  ;;  %v39_v17 = vand.u32 127, %v38_v16  ;;  %v80_v22 = vshrl.u32 %v38_v16, 7  ;;  %vm322_vm5 = vcmask 64512  }
   0x3   :  { %3210 = vmatpush3.msra.mxu0 %v61_v2  ;;  %v59_v5 = vld [vmem:[%s4439_s3 + $0x28] sm:$0xff]  ;;  %3228 = vmatprep.subr.bf16.mxu1 %v3667_v6  ;;  %v62_v8 = vld [vmem:[%s4440_s1] sm:$0xff]  ;;  %v56_v13 = vld [vmem:[%s4439_s3 + $0x10] sm:$0xff]  ;;  %s3673_s18 = smov 64   ;;  %vm818_vm6 = vcmask 1043456   ;;  %s3675_s26 = smov 16  }
   0x4   :  { %3211 = vmatprep.subr.mxu0 %v60_v3  ;;  %v63_v9 = vld [vmem:[%s4440_s1 + $0x8] sm:$0xff]  ;;  %v64_v10 = vcvt.s32.f32 %v62_v8  ;;  %v54_v15 = vld [vmem:[%s4439_s3] sm:$0xff]  ;;  %v3786_v26 = vsub.s32 0, %v80_v22  ;;  %3232 = vmatprep.mubr.msk.bf16.mxu1 %vm3668_vm4, %v3667_v6  ;;  %s3672_s1 = smov 96   ;;  %s3676_s27 = smov 24   ;;  %vm1224_vm7 = vcmask 130048  }
   0x5   :  { %3212 = vmatpush3.msra.mxu0 %v60_v3  ;;  %v65_v12 = vcvt.s32.f32 %v63_v9  ;;  %v55_v14 = vld [vmem:[%s4439_s3 + $0x8] sm:$0xff]  ;;  %v66_v23 = vld [vmem:[%s4439_s3 + $0x40] sm:$0x1]  ;;  %v67_v24 = vld [vmem:[%s4439_s3 + $0x41] sm:$0x1]  ;;  %vm1227_vm8 = vcmask 195584  }
   0x6   :  { %46 = vperm.xlu0 %3512, %v41_v4   ;;  %3213 = vmatprep.subr.mxu0 %v59_v5  ;;  %v68_v27 = vsub.f32 %v67_v24, %v66_v23  ;;  %v88_v31 = vrot.slane %v66_v23, %v3786_v26  ;;  %v91_v36 = vld [vmem:[%s4439_s3 + $0x48] sm:$0xff]  ;;  %v3545_v55 = vld [vmem:[%s4441_s5] sm:$0xff]   ;;  %vm2922_vm9 = vcmask 23552   ;;  %s3677_s30 = smov 32   ;;  %vm2967_vm10 = vcmask 785408  }
   0x7   :  { %3214 = vmatpush3.msra.mxu0 %v59_v5  ;;  %71 = vperm.xlu1 %3513, %v64_v10   ;;  %v3544_v54 = vld [vmem:[%s4441_s5 + $0x8] sm:$0xff]   ;;  %v2982_v0 = vld [vmem:[%s4442_s4] ss:$0 sm:$0xff]  ;;  %v2983_v4 = vld [vmem:[%s4442_s4 + $0x1] ss:$0 sm:$0xff] }
   0x8   :  { %3215 = vmatprep.subr.mxu0 %v58_v7  ;;  %v82_v28 = vrot.slane %v68_v27, %v3786_v26  ;;  %3229 = vmatpush3.bf16.msra.mxu1 %v3544_v54  ;;  %v2984_v10 = vld [vmem:[%s4442_s4 + $0x2] ss:$0 sm:$0xff] }
   0x9   :  { %3216 = vmatpush3.msra.mxu0 %v58_v7  ;;  %3230 = vmatprep.subr.bf16.mxu1 %v3667_v6 }
   0xa   :  { %3217 = vmatprep.subr.mxu0 %v57_v11 }
   0xb   :  { %3218 = vmatpush3.msra.mxu0 %v57_v11  ;;  %76 = vperm.xlu1 %3513, %v65_v12  }
   0xc   :  { %3219 = vmatprep.subr.mxu0 %v56_v13  ;;  %3231 = vmatpush3.bf16.msra.mxu1 %v3545_v55 }
   0xd   :  { %3220 = vmatpush3.msra.mxu0 %v56_v13  ;;  %3236 = vmatprep.subr.bf16.mxu1 %v3667_v6 }
   0xe   :  { %3221 = vmatprep.subr.mxu0 %v55_v14 }
   0xf   :  { %3222 = vmatpush3.msra.mxu0 %v55_v14 }
  0x10   :  { %3223 = vmatprep.subr.mxu0 %v54_v15 }
  0x11   :  { %3224 = vmatpush3.msra.mxu0 %v54_v15 }
  0x12   :  { %3242 = vmatprep.subr.bf16.mxu0 %v3667_v6 }
  0x7d   :  { %v44_v18 = vpop.permute.xlu0 %43 }
  0x7e   :  { %vm48_vm1 = vcmp.eq.s32.totalorder %v39_v17, %v44_v18 }
  0x7f   :  { %v2978_v19 = vsel %vm48_vm1, 1.0, %v3667_v6 }
  0x80   :  { %3225 = vmatprep.mubr.msk.f32.mxu0 %vm92_vm0, %v2978_v19 }
  0x81   :  { %v47_v20 = vpop.permute.xlu0 %46 }
  0x82   :  { %vm49_vm2 = vcmp.eq.s32.totalorder %v39_v17, %v47_v20  ;;  %v72_v25 = vpop.permute.xlu1 %71 }
  0x83   :  { %v2979_v21 = vsel %vm49_vm2, 1.0, %v3667_v6  ;;  %v83_v32 = vmul.f32 %v82_v28, %v72_v25 }
  0x84   :  { %3226 = vmatmul.mubr.msk.f32.vlgmr.msra.gmra.mxu0 %vm92_vm0, %v2979_v21 }
  0x85   :  { %v89_v34 = vadd.f32 %v88_v31, %v83_v32  ;;  %3244 = vmatprep.mubr.msk.bf16.mxu0 %vm3668_vm4, %v3667_v6 }
  0x86   :  { %v77_v29 = vpop.permute.xlu1 %76 }
  0x87   :  { %v84_v30 = vmul.f32 %v82_v28, %v77_v29 }
  0x89   :  { %v90_v33 = vadd.f32 %v88_v31, %v84_v30 }
 0x144   :  { %v3227_v35 = vpop.f32.mrf.mxu0 }
 0x145   :  { %v171_v37 = vadd.f32 %v3227_v35, %v90_v33 }
 0x146   :  { %v165_v38 = vpop.f32.mrf.mxu0 }
 0x147   :  { %v166_v39 = vadd.f32 %v165_v38, %v89_v34  ;;  %v175_v40 = vadd.f32 %v171_v37, %v91_v36 }
 0x149   :  { %v182_v41 = vsel %vm178_vm3, %v175_v40, 0.0  ;;  %v174_v42 = vadd.f32 %v166_v39, %v91_v36 }
 0x14a   :  { %183 = vadd.xlane.f32.xlu1 %v182_v41 }
 0x14b   :  { %v179_v43 = vsel %vm178_vm3, %v174_v42, 0.0 }
 0x14c   :  { %180 = vadd.xlane.f32.xlu0 %v179_v43 }
 0x1d3   :  { %v184_v44 = vpop.xlane.xlu1 %183 }
 0x1d4   :  { %v187_v45 = vmul.f32 0.03125, %v184_v44 }
 0x1d5   :  { %v181_v46 = vpop.xlane.xlu0 %180 }
 0x1d6   :  { %v186_v47 = vmul.f32 0.03125, %v181_v46  ;;  %v189_v48 = vsub.f32 %v175_v40, %v187_v45 }
 0x1d8   :  { %v188_v49 = vsub.f32 %v174_v42, %v186_v47  ;;  %v191_v52 = vmul.f32 %v189_v48, %v189_v48 }
 0x1da   :  { %v190_v50 = vmul.f32 %v188_v49, %v188_v49  ;;  %v195_v53 = vsel %vm178_vm3, %v191_v52, 0.0  ;;  %v219_v52 = vld [vmem:[%s4443_s2 + $0x1] sm:$0x1] }
 0x1dc   :  { %v192_v51 = vsel %vm178_vm3, %v190_v50, 0.0  ;;  %v218_v50 = vld [vmem:[%s4443_s2] sm:$0x1]  ;;  %s3674_s2 = smov 8  }
 0x1dd   :  { %193 = vadd.xlane.f32.xlu0 %v192_v51  ;;  %v220_v51 = vsub.f32 1.0, %v218_v50 }
 0x1df   :  { %v222_v54 = vmul.f32 -10000.0, %v220_v51 }
 0x1e1   :  { %196 = vadd.xlane.f32.xlu0 %v195_v53  ;;  %v221_v53 = vsub.f32 1.0, %v219_v52 }
 0x1e3   :  { %v223_v55 = vmul.f32 -10000.0, %v221_v53 }
 0x266   :  { %v194_v56 = vpop.xlane.xlu0 %193 }
 0x267   :  { %v198_v57 = vmul.f32 0.03125, %v194_v56  ;;  %v3916_v56 = vrot.slane %v222_v54, %v3786_v26 }
 0x269   :  { %v200_v58 = vadd.f32 1e-12, %v198_v57 }
 0x26a   :  { %v197_v59 = vpop.xlane.xlu0 %196 }
 0x26b   :  { %3566 = vrsqrt.f32 %v200_v58  ;;  %v199_v60 = vmul.f32 0.03125, %v197_v59  ;;  %v3919_v58 = vrot.slane %v223_v55, %v3786_v26 }
 0x26d   :  { %v201_v61 = vadd.f32 1e-12, %v199_v60 }
 0x26f   :  { %3568 = vrsqrt.f32 %v201_v61 }
 0x278   :  { %v3567_v62 = vpop.eup %3566 }
 0x279   :  { %v204_v63 = vmul.f32 %v3567_v62, %v188_v49 }
 0x27b   :  { %v210_v3 = vmul.f32 %v2982_v0, %v204_v63 }
 0x27c   :  { %v3569_v1 = vpop.eup %3568 }
 0x27d   :  { %v205_v2 = vmul.f32 %v3569_v1, %v189_v48  ;;  %v3815_v7 = vadd.f32 %v2983_v4, %v210_v3 }
 0x27f   :  { %v211_v5 = vmul.f32 %v2982_v0, %v205_v2 }
 0x281   :  { %v3817_v8 = vadd.f32 %v2983_v4, %v211_v5 }
 0x283   :  { %v224_v9 = vpack.c.bf16 %v3817_v8, %v3815_v7 }
 0x285   :  { %3233 = vmatmul.mubr.msk.bf16.vlgmr.msra.gmra.mxu1 %vm178_vm3, %v224_v9 }
 0x286   :  { %3238 = vmatprep.mubr.msk.bf16.mxu1 %vm3668_vm4, %v3667_v6 }
 0x345   :  { %v283_v11 = vpop.f32.mrf.mxu1 }
 0x346   :  { %v284_v12 = vadd.f32 %v2984_v10, %v283_v11 }
 0x347   :  { %v3234_v13 = vpop.f32.mrf.mxu1 }
 0x348   :  { %v3100_v14 = vpack.c.bf16 %v284_v12, %v284_v12 }
 0x349   :  { %v286_v15 = vpop.f32.mrf.mxu1 }
 0x34a   :  { %v287_v16 = vadd.f32 %v2984_v10, %v286_v15  ;;  %296 = vrot.lane.b32.xlu1 %v3100_v14, %s3669_s15 }
 0x34b   :  { %v3235_v17 = vpop.f32.mrf.mxu1 }
 0x34c   :  { %v3828_v18 = vpack.c.bf16 %v287_v16, %v287_v16 }
 0x34e   :  { %300 = vrot.lane.b32.xlu1 %v3100_v14, %s3670_s16  ;;  %298 = vrot.lane.b32.xlu0 %v3828_v18, %s3669_s15 }
 0x352   :  { %302 = vrot.lane.b32.xlu1 %v3828_v18, %s3670_s16  ;;  %304 = vrot.lane.b32.xlu0 %v3100_v14, %s3671_s17 }
 0x356   :  { %306 = vrot.lane.b32.xlu1 %v3828_v18, %s3671_s17  ;;  %320 = vrot.lane.b32.xlu0 %v3100_v14, %s3672_s1 }
 0x35a   :  { %369 = vrot.lane.b32.xlu1 %v3828_v18, %s3672_s1 }
 0x3bc   :  { %v297_v19 = vpop.permute.xlu1 %296 }
 0x3bd   :  { %v3841_v20 = vcombine.low %v297_v19, %v297_v19 }
 0x3bf   :  { %419 = vrot.lane.b32.xlu0 %v3841_v20, %s3672_s1 }
 0x3c0   :  { %v301_v21 = vpop.permute.xlu1 %300  ;;  %v299_v22 = vpop.permute.xlu0 %298 }
 0x3c1   :  { %v3845_v23 = vcombine.low %v301_v21, %v301_v21  ;;  %v3847_v24 = vcombine.low %v299_v22, %v299_v22 }
 0x3c3   :  { %519 = vrot.lane.b32.xlu0 %v3845_v23, %s3672_s1  ;;  %469 = vrot.lane.b32.xlu1 %v3847_v24, %s3672_s1 }
 0x3c4   :  { %v303_v25 = vpop.permute.xlu1 %302  ;;  %v305_v27 = vpop.permute.xlu0 %304 }
 0x3c5   :  { %v3853_v28 = vcombine.low %v303_v25, %v303_v25  ;;  %v3855_v29 = vcombine.low %v305_v27, %v305_v27 }
 0x3c7   :  { %569 = vrot.lane.b32.xlu1 %v3853_v28, %s3672_s1  ;;  %619 = vrot.lane.b32.xlu0 %v3855_v29, %s3672_s1 }
 0x3c8   :  { %v307_v30 = vpop.permute.xlu1 %306  ;;  %v321_v31 = vpop.permute.xlu0 %320 }
 0x3c9   :  { %v3861_v32 = vcombine.low %v307_v30, %v307_v30  ;;  %v327_v33 = vsel %vm322_vm5, %v321_v31, 0 }
 0x3ca   :  { %3237 = vmatpush3.bf16.xpose.msra.mxu1 %v327_v33 }
 0x3cb   :  { %669 = vrot.lane.b32.xlu1 %v3861_v32, %s3672_s1  ;;  %3248 = vmatprep.subr.bf16.mxu1 %v3667_v6 }
 0x3cc   :  { %v370_v34 = vpop.permute.xlu1 %369 }
 0x3cd   :  { %v375_v35 = vsel %vm322_vm5, %v370_v34, 0 }
 0x3ce   :  { %3243 = vmatpush3.bf16.xpose.msra.mxu0 %v375_v35 }
 0x3cf   :  { %813 = vrot.lane.b32.xlu1 %v3100_v14, %s3673_s18  ;;  %3254 = vmatprep.subr.bf16.mxu0 %v3667_v6 }
 0x3d1   :  { %3239 = vmatmul.mubr.msk.bf16.vlgmr.msra.gmra.mxu1 %vm322_vm5, %v3100_v14 }
 0x3d2   :  { %3250 = vmatprep.mubr.msk.bf16.mxu1 %vm3668_vm4, %v3667_v6 }
 0x3d5   :  { %3245 = vmatmul.mubr.msk.bf16.vlgmr.msra.gmra.mxu0 %vm322_vm5, %v3828_v18 }
 0x3d6   :  { %3256 = vmatprep.mubr.msk.bf16.mxu0 %vm3668_vm4, %v3667_v6 }
 0x431   :  { %v420_v36 = vpop.permute.xlu0 %419 }
 0x432   :  { %v425_v37 = vsel %vm322_vm5, %v420_v36, 0 }
 0x433   :  { %3249 = vmatpush3.bf16.xpose.msra.mxu1 %v425_v37 }
 0x434   :  { %3260 = vmatprep.subr.bf16.mxu1 %v3667_v6 }
 0x435   :  { %v470_v38 = vpop.permute.xlu1 %469  ;;  %v520_v40 = vpop.permute.xlu0 %519 }
 0x436   :  { %v475_v39 = vsel %vm322_vm5, %v470_v38, 0  ;;  %v525_v41 = vsel %vm322_vm5, %v520_v40, 0 }
 0x437   :  { %3255 = vmatpush3.bf16.xpose.msra.mxu0 %v475_v39 }
 0x438   :  { %3266 = vmatprep.subr.bf16.mxu0 %v3667_v6 }
 0x439   :  { %v570_v42 = vpop.permute.xlu1 %569  ;;  %v620_v44 = vpop.permute.xlu0 %619 }
 0x43a   :  { %3251 = vmatmul.mubr.msk.bf16.vlgmr.msra.gmra.mxu1 %vm322_vm5, %v297_v19  ;;  %v575_v43 = vsel %vm322_vm5, %v570_v42, 0  ;;  %v625_v46 = vsel %vm322_vm5, %v620_v44, 0 }
 0x43b   :  { %3261 = vmatpush3.bf16.xpose.msra.mxu1 %v525_v41  ;;  %3262 = vmatprep.mubr.msk.bf16.mxu1 %vm3668_vm4, %v3667_v6 }
 0x43c   :  { %3272 = vmatprep.subr.bf16.mxu1 %v3667_v6 }
 0x43d   :  { %v670_v45 = vpop.permute.xlu1 %669 }
 0x43e   :  { %3257 = vmatmul.mubr.msk.bf16.vlgmr.msra.gmra.mxu0 %vm322_vm5, %v299_v22  ;;  %v675_v47 = vsel %vm322_vm5, %v670_v45, 0 }
 0x43f   :  { %3267 = vmatpush3.bf16.xpose.msra.mxu0 %v575_v43  ;;  %3268 = vmatprep.mubr.msk.bf16.mxu0 %vm3668_vm4, %v3667_v6 }
 0x440   :  { %3278 = vmatprep.subr.bf16.mxu0 %v3667_v6 }
 0x441   :  { %v814_v48 = vpop.permute.xlu1 %813 }
 0x442   :  { %3263 = vmatmul.mubr.msk.bf16.vlgmr.msra.gmra.mxu1 %vm322_vm5, %v301_v21  ;;  %v820_v49 = vsel %vm818_vm6, %v814_v48, 0 }
 0x443   :  { %3273 = vmatpush3.bf16.xpose.msra.mxu1 %v625_v46  ;;  %3274 = vmatprep.mubr.msk.bf16.mxu1 %vm3668_vm4, %v3667_v6 }
 0x444   :  { %3284 = vmatprep.subr.bf16.mxu1 %v3667_v6 }
 0x446   :  { %3269 = vmatmul.mubr.msk.bf16.vlgmr.msra.gmra.mxu0 %vm322_vm5, %v303_v25 }
 0x447   :  { %3279 = vmatpush3.bf16.xpose.msra.mxu0 %v675_v47  ;;  %3280 = vmatprep.mubr.msk.bf16.mxu0 %vm3668_vm4, %v3667_v6 }
 0x448   :  { %3290 = vmatprep.subr.bf16.mxu0 %v3667_v6 }
 0x44a   :  { %3275 = vmatmul.mubr.msk.bf16.vlgmr.msra.gmra.mxu1 %vm322_vm5, %v305_v27 }
 0x44b   :  { %3285 = vmatpush3.bf16.msra.mxu1 %v820_v49  ;;  %3286 = vmatprep.mubr.msk.bf16.mxu1 %vm3668_vm4, %v3667_v6 }
 0x44c   :  { %3296 = vmatprep.subr.bf16.mxu1 %v3667_v6 }
 0x44e   :  { %3281 = vmatmul.mubr.msk.bf16.vlgmr.msra.gmra.mxu0 %vm322_vm5, %v307_v30 }
 0x44f   :  { %3292 = vmatprep.mubr.msk.bf16.mxu0 %vm3668_vm4, %v3667_v6 }
 0x491   :  { %v363_v57 = vpop.f32.mrf.mxu1 }
 0x492   :  { %v364_v59 = vadd.f32 %v363_v57, %v3916_v56 }
 0x493   :  { %v3240_v60 = vpop.f32.mrf.mxu1 }
 0x494   :  { %v717_v61 = vsel %vm322_vm5, %v364_v59, -inf }
 0x495   :  { %v411_v62 = vpop.f32.mrf.mxu0  ;;  %718 = vmax.xlane.f32.xlu0 %v717_v61  ;;  %v366_v63 = vpop.f32.mrf.mxu1 }
 0x496   :  { %v412_v0 = vadd.f32 %v411_v62, %v3919_v58 }
 0x497   :  { %v3241_v1 = vpop.f32.mrf.mxu1  ;;  %v3246_v2 = vpop.f32.mrf.mxu0 }
 0x498   :  { %v720_v3 = vsel %vm322_vm5, %v412_v0, -inf }
 0x499   :  { %v414_v4 = vpop.f32.mrf.mxu0  ;;  %721 = vmax.xlane.f32.xlu1 %v720_v3 }
 0x49b   :  { %v3247_v5 = vpop.f32.mrf.mxu0 }
 0x4fa   :  { %v461_v9 = vpop.f32.mrf.mxu1 }
 0x4fb   :  { %v462_v26 = vadd.f32 %v461_v9, %v3916_v56 }
 0x4fc   :  { %v3252_v10 = vpop.f32.mrf.mxu1 }
 0x4fd   :  { %v723_v11 = vsel %vm322_vm5, %v462_v26, -inf }
 0x4fe   :  { %v511_v12 = vpop.f32.mrf.mxu0  ;;  %724 = vmax.xlane.f32.xlu0 %v723_v11  ;;  %v464_v13 = vpop.f32.mrf.mxu1 }
 0x4ff   :  { %v512_v14 = vadd.f32 %v511_v12, %v3919_v58 }
 0x500   :  { %v3253_v15 = vpop.f32.mrf.mxu1  ;;  %v3258_v16 = vpop.f32.mrf.mxu0 }
 0x501   :  { %v726_v17 = vsel %vm322_vm5, %v512_v14, -inf }
 0x502   :  { %v514_v19 = vpop.f32.mrf.mxu0  ;;  %727 = vmax.xlane.f32.xlu0 %v726_v17  ;;  %v561_v21 = vpop.f32.mrf.mxu1 }
 0x503   :  { %v3930_v22 = vadd.f32 %v561_v21, %v3916_v56 }
 0x504   :  { %v3259_v25 = vpop.f32.mrf.mxu0  ;;  %v3264_v27 = vpop.f32.mrf.mxu1 }
 0x505   :  { %v729_v30 = vsel %vm322_vm5, %v3930_v22, -inf }
 0x506   :  { %v611_v31 = vpop.f32.mrf.mxu0  ;;  %730 = vmax.xlane.f32.xlu1 %v729_v30  ;;  %v564_v33 = vpop.f32.mrf.mxu1 }
 0x507   :  { %v3935_v34 = vadd.f32 %v611_v31, %v3919_v58 }
 0x508   :  { %v3265_v35 = vpop.f32.mrf.mxu1  ;;  %v3270_v36 = vpop.f32.mrf.mxu0 }
 0x509   :  { %v732_v37 = vsel %vm322_vm5, %v3935_v34, -inf }
 0x50a   :  { %v614_v38 = vpop.f32.mrf.mxu0  ;;  %733 = vmax.xlane.f32.xlu0 %v732_v37  ;;  %v661_v39 = vpop.f32.mrf.mxu1 }
 0x50b   :  { %v662_v40 = vadd.f32 %v661_v39, %v3916_v56 }
 0x50c   :  { %v3271_v41 = vpop.f32.mrf.mxu0  ;;  %v3276_v42 = vpop.f32.mrf.mxu1 }
 0x50d   :  { %v735_v43 = vsel %vm322_vm5, %v662_v40, -inf }
 0x50e   :  { %v711_v44 = vpop.f32.mrf.mxu0  ;;  %736 = vmax.xlane.f32.xlu1 %v735_v43  ;;  %v664_v45 = vpop.f32.mrf.mxu1 }
 0x50f   :  { %v712_v46 = vadd.f32 %v711_v44, %v3919_v58 }
 0x510   :  { %v3277_v47 = vpop.f32.mrf.mxu1  ;;  %v3282_v48 = vpop.f32.mrf.mxu0 }
 0x511   :  { %v738_v49 = vsel %vm322_vm5, %v712_v46, -inf }
 0x512   :  { %v714_v50 = vpop.f32.mrf.mxu0  ;;  %739 = vmax.xlane.f32.xlu0 %v738_v49 }
 0x514   :  { %v3283_v51 = vpop.f32.mrf.mxu0 }
 0x51e   :  { %v719_v52 = vpop.xlane.xlu0 %718 }
 0x51f   :  { %910 = vrot.lane.b32.xlu1 %v3841_v20, %s3673_s18  ;;  %v741_v54 = vsub.f32 %v364_v59, %v719_v52 }
 0x521   :  { %v749_v57 = vmul.f32 1.442695, %v741_v54 }
 0x522   :  { %v722_v53 = vpop.xlane.xlu1 %721 }
 0x523   :  { %958 = vrot.lane.b32.xlu1 %v3847_v24, %s3673_s18  ;;  %v742_v55 = vsub.f32 %v412_v0, %v722_v53  ;;  %3570 = vpow2.f32 %v749_v57 }
 0x525   :  { %v751_v60 = vmul.f32 1.442695, %v742_v55 }
 0x527   :  { %3572 = vpow2.f32 %v751_v60 }
 0x528   :  { %862 = vrot.lane.b32.xlu0 %v3828_v18, %s3673_s18 }
 0x530   :  { %v3949_v61 = vpop.eup %3570 }
 0x531   :  { %v765_v20 = vsel %vm322_vm5, %v3949_v61, 0.0 }
 0x534   :  { %v3573_v62 = vpop.eup %3572 }
 0x535   :  { %v768_v63 = vsel %vm322_vm5, %v3573_v62, 0.0 }
 0x547   :  { %769 = vadd.xlane.f32.xlu0 %v768_v63  ;;  %766 = vadd.xlane.f32.xlu1 %v765_v20 }
 0x587   :  { %v725_v24 = vpop.xlane.xlu0 %724 }
 0x588   :  { %v743_v18 = vsub.f32 %v462_v26, %v725_v24 }
 0x58a   :  { %v753_v1 = vmul.f32 1.442695, %v743_v18 }
 0x58b   :  { %v728_v2 = vpop.xlane.xlu0 %727 }
 0x58c   :  { %3574 = vpow2.f32 %v753_v1  ;;  %v744_v59 = vsub.f32 %v512_v14, %v728_v2 }
 0x58e   :  { %v755_v0 = vmul.f32 1.442695, %v744_v59 }
 0x58f   :  { %v731_v13 = vpop.xlane.xlu1 %730 }
 0x590   :  { %3576 = vpow2.f32 %v755_v0  ;;  %v745_v14 = vsub.f32 %v3930_v22, %v731_v13 }
 0x592   :  { %v757_v17 = vmul.f32 1.442695, %v745_v14 }
 0x593   :  { %v734_v3 = vpop.xlane.xlu0 %733 }
 0x594   :  { %v746_v16 = vsub.f32 %v3935_v34, %v734_v3  ;;  %3578 = vpow2.f32 %v757_v17 }
 0x596   :  { %v759_v21 = vmul.f32 1.442695, %v746_v16 }
 0x597   :  { %v737_v15 = vpop.xlane.xlu1 %736 }
 0x598   :  { %v747_v19 = vsub.f32 %v662_v40, %v737_v15  ;;  %3580 = vpow2.f32 %v759_v21 }
 0x599   :  { %v3954_v4 = vpop.eup %3574 }
 0x59a   :  { %v771_v5 = vsel %vm322_vm5, %v3954_v4, 0.0  ;;  %v761_v25 = vmul.f32 1.442695, %v747_v19 }
 0x59b   :  { %v740_v9 = vpop.xlane.xlu0 %739  ;;  %772 = vadd.xlane.f32.xlu1 %v771_v5  ;;  %v911_v31 = vpop.permute.xlu1 %910 }
 0x59c   :  { %v748_v27 = vsub.f32 %v712_v46, %v740_v9  ;;  %3582 = vpow2.f32 %v761_v25  ;;  %v916_v48 = vsel %vm818_vm6, %v911_v31, 0 }
 0x59d   :  { %v3958_v10 = vpop.eup %3576 }
 0x59e   :  { %v774_v11 = vsel %vm322_vm5, %v3958_v10, 0.0  ;;  %v763_v30 = vmul.f32 1.442695, %v748_v27 }
 0x59f   :  { %775 = vadd.xlane.f32.xlu0 %v774_v11  ;;  %v863_v26 = vpop.permute.xlu0 %862  ;;  %v959_v33 = vpop.permute.xlu1 %958 }
 0x5a0   :  { %v868_v12 = vsel %vm818_vm6, %v863_v26, 0  ;;  %3584 = vpow2.f32 %v763_v30  ;;  %v964_v47 = vsel %vm818_vm6, %v959_v33, 0 }
 0x5a1   :  { %3291 = vmatpush3.bf16.msra.mxu0 %v868_v12 }
 0x5a2   :  { %3302 = vmatprep.subr.bf16.mxu0 %v3667_v6 }
 0x5ac   :  { %1054 = vrot.lane.b32.xlu1 %v3853_v28, %s3673_s18  ;;  %v3970_v28 = vpop.eup %3578 }
 0x5ad   :  { %v777_v22 = vsel %vm322_vm5, %v3970_v28, 0.0 }
 0x5b5   :  { %1006 = vrot.lane.b32.xlu0 %v3845_v23, %s3673_s18  ;;  %v3972_v23 = vpop.eup %3580 }
 0x5b6   :  { %v3976_v34 = vpop.eup %3582  ;;  %v780_v37 = vsel %vm322_vm5, %v3972_v23, 0.0 }
 0x5b7   :  { %v783_v38 = vsel %vm322_vm5, %v3976_v34, 0.0  ;;  %v3982_v39 = vpop.eup %3584 }
 0x5b8   :  { %v786_v40 = vsel %vm322_vm5, %v3982_v39, 0.0 }
 0x5d0   :  { %v770_v35 = vpop.xlane.xlu0 %769  ;;  %778 = vadd.xlane.f32.xlu1 %v777_v22  ;;  %v767_v36 = vpop.xlane.xlu1 %766 }
 0x5d1   :  { %3586 = vrcp.f32 %v770_v35 }
 0x5d2   :  { %3588 = vrcp.f32 %v767_v36 }
 0x5d4   :  { %781 = vadd.xlane.f32.xlu0 %v780_v37  ;;  %784 = vadd.xlane.f32.xlu1 %v783_v38 }
 0x5d8   :  { %787 = vadd.xlane.f32.xlu0 %v786_v40 }
 0x5de   :  { %v3587_v41 = vpop.eup %3586 }
 0x5df   :  { %v3589_v42 = vpop.eup %3588  ;;  %v798_v43 = vmul.f32 %v3587_v41, %v3573_v62 }
 0x5e0   :  { %v797_v44 = vmul.f32 %v3589_v42, %v3949_v61 }
 0x5e1   :  { %v806_v45 = vpack.c.bf16 %v798_v43, %v798_v43 }
 0x5e2   :  { %v805_v46 = vpack.c.bf16 %v797_v44, %v797_v44  ;;  %v3547_v44 = vld [vmem:[%s4444_s6] sm:$0xff]  }
 0x5e3   :  { %3293 = vmatmul.mubr.msk.bf16.vlgmr.msra.gmra.mxu0 %vm322_vm5, %v806_v45 }
 0x5e4   :  { %3287 = vmatmul.mubr.msk.bf16.vlgmr.msra.gmra.mxu1 %vm322_vm5, %v805_v46  ;;  %3303 = vmatpush3.bf16.msra.mxu0 %v964_v47 }
 0x5e5   :  { %3297 = vmatpush3.bf16.msra.mxu1 %v916_v48  ;;  %1150 = vrot.lane.b32.xlu1 %v3861_v32, %s3673_s18 }
 0x5e6   :  { %3298 = vmatprep.mubr.msk.bf16.mxu1 %vm3668_vm4, %v3667_v6  ;;  %3308 = vmatprep.subr.bf16.mxu1 %v3667_v6 }
 0x5e7   :  { %3304 = vmatprep.mubr.msk.bf16.mxu0 %vm3668_vm4, %v3667_v6  ;;  %3314 = vmatprep.subr.bf16.mxu0 %v3667_v6 }
 0x5ee   :  { %1102 = vrot.lane.b32.xlu0 %v3855_v29, %s3673_s18 }
 0x624   :  { %v773_v49 = vpop.xlane.xlu1 %772 }
 0x625   :  { %3590 = vrcp.f32 %v773_v49 }
 0x628   :  { %v776_v50 = vpop.xlane.xlu0 %775  ;;  %v1055_v60 = vpop.permute.xlu1 %1054 }
 0x629   :  { %3592 = vrcp.f32 %v776_v50  ;;  %v1060_v61 = vsel %vm818_vm6, %v1055_v60, 0 }
 0x62c   :  { %v1007_v52 = vpop.permute.xlu0 %1006 }
 0x62d   :  { %v1012_v55 = vsel %vm818_vm6, %v1007_v52, 0 }
 0x632   :  { %v3591_v51 = vpop.eup %3590 }
 0x633   :  { %v799_v32 = vmul.f32 %v3591_v51, %v3954_v4 }
 0x635   :  { %v807_v53 = vpack.c.bf16 %v799_v32, %v799_v32 }
 0x636   :  { %v3593_v54 = vpop.eup %3592 }
 0x637   :  { %3299 = vmatmul.mubr.msk.bf16.vlgmr.msra.gmra.mxu1 %vm322_vm5, %v807_v53  ;;  %v800_v57 = vmul.f32 %v3593_v54, %v3958_v10 }
 0x638   :  { %3309 = vmatpush3.bf16.msra.mxu1 %v1012_v55  ;;  %3310 = vmatprep.mubr.msk.bf16.mxu1 %vm3668_vm4, %v3667_v6 }
 0x639   :  { %v808_v29 = vpack.c.bf16 %v800_v57, %v800_v57  ;;  %3320 = vmatprep.subr.bf16.mxu1 %v3667_v6 }
 0x63b   :  { %3305 = vmatmul.mubr.msk.bf16.vlgmr.msra.gmra.mxu0 %vm322_vm5, %v808_v29 }
 0x63c   :  { %3315 = vmatpush3.bf16.msra.mxu0 %v1060_v61  ;;  %3316 = vmatprep.mubr.msk.bf16.mxu0 %vm3668_vm4, %v3667_v6 }
 0x63d   :  { %3326 = vmatprep.subr.bf16.mxu0 %v3667_v6 }
 0x659   :  { %v779_v62 = vpop.xlane.xlu1 %778 }
 0x65a   :  { %3594 = vrcp.f32 %v779_v62 }
 0x65d   :  { %v782_v63 = vpop.xlane.xlu0 %781  ;;  %v785_v20 = vpop.xlane.xlu1 %784 }
 0x65e   :  { %3596 = vrcp.f32 %v782_v63 }
 0x65f   :  { %3598 = vrcp.f32 %v785_v20 }
 0x661   :  { %v788_v24 = vpop.xlane.xlu0 %787  ;;  %v1151_v9 = vpop.permute.xlu1 %1150 }
 0x662   :  { %3600 = vrcp.f32 %v788_v24  ;;  %v1156_v12 = vsel %vm818_vm6, %v1151_v9, 0 }
 0x665   :  { %v1103_v2 = vpop.permute.xlu0 %1102 }
 0x666   :  { %v1108_v4 = vsel %vm818_vm6, %v1103_v2, 0 }
 0x667   :  { %v3595_v18 = vpop.eup %3594 }
 0x668   :  { %v801_v1 = vmul.f32 %v3595_v18, %v3970_v28 }
 0x66a   :  { %v809_v59 = vpack.c.bf16 %v801_v1, %v801_v1 }
 0x66b   :  { %v3597_v0 = vpop.eup %3596 }
 0x66c   :  { %v3599_v3 = vpop.eup %3598  ;;  %3311 = vmatmul.mubr.msk.bf16.vlgmr.msra.gmra.mxu1 %vm322_vm5, %v809_v59  ;;  %v802_v5 = vmul.f32 %v3597_v0, %v3972_v23 }
 0x66d   :  { %3321 = vmatpush3.bf16.msra.mxu1 %v1108_v4  ;;  %3322 = vmatprep.mubr.msk.bf16.mxu1 %vm3668_vm4, %v3667_v6  ;;  %v803_v11 = vmul.f32 %v3599_v3, %v3976_v34 }
 0x66e   :  { %v810_v10 = vpack.c.bf16 %v802_v5, %v802_v5  ;;  %3332 = vmatprep.subr.bf16.mxu1 %v3667_v6 }
 0x66f   :  { %v3601_v26 = vpop.eup %3600  ;;  %v811_v13 = vpack.c.bf16 %v803_v11, %v803_v11  ;;  %v3012_v11 = vld [vmem:[%s4442_s4 + $0x3] ss:$0 sm:$0xff] }
 0x670   :  { %3317 = vmatmul.mubr.msk.bf16.vlgmr.msra.gmra.mxu0 %vm322_vm5, %v810_v10  ;;  %v804_v14 = vmul.f32 %v3601_v26, %v3982_v39  ;;  %v3546_v39 = vld [vmem:[%s4444_s6 + $0x8] sm:$0xff]  }
 0x671   :  { %3327 = vmatpush3.bf16.msra.mxu0 %v1156_v12  ;;  %3328 = vmatprep.mubr.msk.bf16.mxu0 %vm3668_vm4, %v3667_v6 }
 0x672   :  { %3340 = vmatprep.subr.bf16.mxu0 %v3667_v6  ;;  %v812_v15 = vpack.c.bf16 %v804_v14, %v804_v14 }
 0x674   :  { %3323 = vmatmul.mubr.msk.bf16.vlgmr.msra.gmra.mxu1 %vm322_vm5, %v811_v13 }
 0x675   :  { %3336 = vmatprep.mubr.msk.bf16.mxu1 %vm3668_vm4, %v3667_v6  ;;  %3333 = vmatpush3.bf16.msra.mxu1 %v3546_v39 }
 0x676   :  { %3334 = vmatprep.subr.bf16.mxu1 %v3667_v6 }
 0x678   :  { %3329 = vmatmul.mubr.msk.bf16.vlgmr.msra.gmra.mxu0 %vm322_vm5, %v812_v15 }
 0x679   :  { %3344 = vmatprep.mubr.msk.bf16.mxu0 %vm3668_vm4, %v3667_v6  ;;  %3335 = vmatpush3.bf16.msra.mxu1 %v3547_v44 }
 0x67a   :  { %3348 = vmatprep.subr.bf16.mxu1 %v3667_v6 }
 0x6a3   :  { %v904_v16 = vpop.f32.mrf.mxu0 }
 0x6a4   :  { %v856_v17 = vpop.f32.mrf.mxu1 }
 0x6a5   :  { %v3294_v19 = vpop.f32.mrf.mxu0 }
 0x6a6   :  { %v3288_v21 = vpop.f32.mrf.mxu1 }
 0x6a7   :  { %v907_v25 = vpop.f32.mrf.mxu0 }
 0x6a8   :  { %v859_v27 = vpop.f32.mrf.mxu1 }
 0x6a9   :  { %v3295_v30 = vpop.f32.mrf.mxu0 }
 0x6aa   :  { %v3289_v31 = vpop.f32.mrf.mxu1 }
 0x6f7   :  { %v952_v28 = vpop.f32.mrf.mxu1 }
 0x6f9   :  { %v3300_v33 = vpop.f32.mrf.mxu1 }
 0x6fb   :  { %v955_v23 = vpop.f32.mrf.mxu1  ;;  %v1000_v22 = vpop.f32.mrf.mxu0 }
 0x6fc   :  { %v3514_v34 = vpack.i.bf16 %v1000_v22, %v952_v28 }
 0x6fd   :  { %v3301_v35 = vpop.f32.mrf.mxu1  ;;  %v3306_v36 = vpop.f32.mrf.mxu0 }
 0x6fe   :  { %3515 = vrot.lane.b32.xlu0 %v3514_v34, %s3674_s2 }
 0x6ff   :  { %v1003_v37 = vpop.f32.mrf.mxu0 }
 0x700   :  { %v3548_v37 = vld [vmem:[%s4445_s7 + $0x8] sm:$0xff]  }
 0x701   :  { %v3307_v38 = vpop.f32.mrf.mxu0  ;;  %3341 = vmatpush3.bf16.msra.mxu0 %v3548_v37 }
 0x702   :  { %v3549_v38 = vld [vmem:[%s4445_s7] sm:$0xff]   ;;  %3342 = vmatprep.subr.bf16.mxu0 %v3667_v6 }
 0x705   :  { %3343 = vmatpush3.bf16.msra.mxu0 %v3549_v38 }
 0x706   :  { %3360 = vmatprep.subr.bf16.mxu0 %v3667_v6 }
 0x72c   :  { %v1048_v40 = vpop.f32.mrf.mxu1 }
 0x72e   :  { %v3312_v41 = vpop.f32.mrf.mxu1 }
 0x730   :  { %v1051_v42 = vpop.f32.mrf.mxu1  ;;  %v1096_v43 = vpop.f32.mrf.mxu0 }
 0x731   :  { %v3519_v45 = vpack.i.bf16 %v1096_v43, %v1048_v40 }
 0x732   :  { %v3313_v46 = vpop.f32.mrf.mxu1  ;;  %v3318_v47 = vpop.f32.mrf.mxu0 }
 0x733   :  { %3520 = vrot.lane.b32.xlu1 %v3519_v45, %s3675_s26  ;;  %v3016_v47 = vld [vmem:[%s4442_s4 + $0x4] ss:$0 sm:$0xff] }
 0x734   :  { %v1099_v48 = vpop.f32.mrf.mxu0  ;;  %v1144_v49 = vpop.f32.mrf.mxu1 }
 0x736   :  { %v3319_v50 = vpop.f32.mrf.mxu0  ;;  %v3324_v51 = vpop.f32.mrf.mxu1 }
 0x737   :  { %v3017_v51 = vld [vmem:[%s4442_s4 + $0x5] ss:$0 sm:$0xff] }
 0x738   :  { %v1147_v32 = vpop.f32.mrf.mxu1  ;;  %v1192_v52 = vpop.f32.mrf.mxu0 }
 0x739   :  { %v3524_v53 = vpack.i.bf16 %v1192_v52, %v1144_v49 }
 0x73a   :  { %v3325_v54 = vpop.f32.mrf.mxu1  ;;  %v3330_v55 = vpop.f32.mrf.mxu0 }
 0x73b   :  { %3525 = vrot.lane.b32.xlu0 %v3524_v53, %s3676_s27  ;;  %v3550_v55 = vld [vmem:[%s4446_s8 + $0x18] sm:$0xff]  }
 0x73c   :  { %v1195_v57 = vpop.f32.mrf.mxu0 }
 0x73d   :  { %v3551_v57 = vld [vmem:[%s4446_s8 + $0x10] sm:$0xff]  }
 0x73e   :  { %v3331_v60 = vpop.f32.mrf.mxu0 }
 0x73f   :  { %v3552_v60 = vld [vmem:[%s4446_s8 + $0x8] sm:$0xff]  }
 0x770   :  { %v3516_v29 = vpop.permute.xlu0 %3515 }
 0x771   :  { %v3518_v62 = vunpack.i.h.bf16 %v3516_v29  ;;  %v3517_v63 = vunpack.i.l.bf16 %v3516_v29  ;;  %v3553_v29 = vld [vmem:[%s4446_s8] sm:$0xff]  }
 0x773   :  { %v1223_v1 = vsel %vm322_vm5, %v904_v16, %v3518_v62  ;;  %v1222_v2 = vsel %vm322_vm5, %v856_v17, %v3517_v63 }
 0x7a5   :  { %v3521_v61 = vpop.permute.xlu1 %3520 }
 0x7a6   :  { %v3523_v20 = vunpack.i.h.bf16 %v3521_v61  ;;  %v3522_v24 = vunpack.i.l.bf16 %v3521_v61  ;;  %v3018_v61 = vld [vmem:[%s4442_s4 + $0x6] ss:$0 sm:$0xff] }
 0x7a8   :  { %v1226_v3 = vsel %vm1224_vm7, %v1223_v1, %v3523_v20  ;;  %v1225_v4 = vsel %vm1224_vm7, %v1222_v2, %v3522_v24 }
 0x7ad   :  { %v3526_v18 = vpop.permute.xlu0 %3525 }
 0x7ae   :  { %v3528_v59 = vunpack.i.h.bf16 %v3526_v18  ;;  %v3527_v0 = vunpack.i.l.bf16 %v3526_v18 }
 0x7b0   :  { %v1229_v5 = vsel %vm1227_vm8, %v1226_v3, %v3528_v59  ;;  %v1228_v9 = vsel %vm1227_vm8, %v1225_v4, %v3527_v0 }
 0x7b1   :  { %v1230_v10 = vpack.c.bf16 %v1229_v5, %v1228_v9 }
 0x7b3   :  { %3337 = vmatmul.mubr.msk.bf16.vlgmr.msra.gmra.mxu1 %vm178_vm3, %v1230_v10 }
 0x7b4   :  { %3356 = vmatprep.mubr.msk.bf16.mxu1 %vm3668_vm4, %v3667_v6  ;;  %3349 = vmatpush3.bf16.msra.mxu1 %v3550_v55 }
 0x7b5   :  { %3350 = vmatprep.subr.bf16.mxu1 %v3667_v6 }
 0x7b8   :  { %3351 = vmatpush3.bf16.msra.mxu1 %v3551_v57 }
 0x7b9   :  { %3352 = vmatprep.subr.bf16.mxu1 %v3667_v6 }
 0x7bc   :  { %3353 = vmatpush3.bf16.msra.mxu1 %v3552_v60  ;;  %v3028_v60 = vld [vmem:[%s4442_s4 + $0x8] ss:$0 sm:$0xff] }
 0x7bd   :  { %3354 = vmatprep.subr.bf16.mxu1 %v3667_v6 }
 0x7c0   :  { %3355 = vmatpush3.bf16.msra.mxu1 %v3553_v29 }
 0x7c1   :  { %3374 = vmatprep.subr.bf16.mxu1 %v3667_v6 }
 0x873   :  { %v1289_v26 = vpop.f32.mrf.mxu1 }
 0x874   :  { %v1290_v12 = vadd.f32 %v3012_v11, %v1289_v26 }
 0x875   :  { %v3338_v13 = vpop.f32.mrf.mxu1 }
 0x876   :  { %v1296_v14 = vadd.f32 %v1290_v12, %v3815_v7 }
 0x877   :  { %v1292_v15 = vpop.f32.mrf.mxu1 }
 0x878   :  { %v1293_v16 = vadd.f32 %v3012_v11, %v1292_v15  ;;  %v1300_v17 = vsel %vm178_vm3, %v1296_v14, 0.0 }
 0x879   :  { %1301 = vadd.xlane.f32.xlu1 %v1300_v17  ;;  %v3339_v19 = vpop.f32.mrf.mxu1 }
 0x87a   :  { %v1297_v21 = vadd.f32 %v1293_v16, %v3817_v8 }
 0x87c   :  { %v1303_v25 = vsel %vm178_vm3, %v1297_v21, 0.0 }
 0x87d   :  { %1304 = vadd.xlane.f32.xlu0 %v1303_v25 }
 0x902   :  { %v1302_v27 = vpop.xlane.xlu1 %1301 }
 0x903   :  { %v1306_v30 = vmul.f32 0.03125, %v1302_v27  ;;  %v3022_v27 = vld [vmem:[%s4442_s4 + $0x7] ss:$0 sm:$0xff] }
 0x905   :  { %v1308_v31 = vsub.f32 %v1296_v14, %v1306_v30 }
 0x906   :  { %v1305_v28 = vpop.xlane.xlu0 %1304 }
 0x907   :  { %v1307_v33 = vmul.f32 0.03125, %v1305_v28  ;;  %v1310_v23 = vmul.f32 %v1308_v31, %v1308_v31 }
 0x909   :  { %v1309_v22 = vsub.f32 %v1297_v21, %v1307_v33  ;;  %v1312_v34 = vsel %vm178_vm3, %v1310_v23, 0.0 }
 0x90a   :  { %1313 = vadd.xlane.f32.xlu0 %v1312_v34 }
 0x90b   :  { %v1311_v35 = vmul.f32 %v1309_v22, %v1309_v22 }
 0x90d   :  { %v1315_v36 = vsel %vm178_vm3, %v1311_v35, 0.0 }
 0x90e   :  { %1316 = vadd.xlane.f32.xlu1 %v1315_v36 }
 0x993   :  { %v1314_v39 = vpop.xlane.xlu0 %1313 }
 0x994   :  { %v1318_v40 = vmul.f32 0.03125, %v1314_v39 }
 0x996   :  { %v1320_v41 = vadd.f32 1e-12, %v1318_v40 }
 0x997   :  { %v1317_v42 = vpop.xlane.xlu1 %1316 }
 0x998   :  { %3602 = vrsqrt.f32 %v1320_v41  ;;  %v1319_v43 = vmul.f32 0.03125, %v1317_v42 }
 0x99a   :  { %v1321_v44 = vadd.f32 1e-12, %v1319_v43 }
 0x99c   :  { %3604 = vrsqrt.f32 %v1321_v44 }
 0x9a5   :  { %v3603_v45 = vpop.eup %3602 }
 0x9a6   :  { %v1324_v46 = vmul.f32 %v3603_v45, %v1308_v31 }
 0x9a8   :  { %v1330_v50 = vmul.f32 %v3016_v47, %v1324_v46 }
 0x9a9   :  { %v3605_v48 = vpop.eup %3604 }
 0x9aa   :  { %v1325_v49 = vmul.f32 %v3605_v48, %v1309_v22  ;;  %v1336_v52 = vadd.f32 %v3017_v51, %v1330_v50  ;;  %v3554_v48 = vld [vmem:[%s4441_s5 + $0x18] sm:$0xff]  }
 0x9ac   :  { %v1331_v32 = vmul.f32 %v3016_v47, %v1325_v49  ;;  %v3555_v49 = vld [vmem:[%s4441_s5 + $0x10] sm:$0xff]  }
 0x9ae   :  { %v1337_v53 = vadd.f32 %v3017_v51, %v1331_v32 }
 0x9b0   :  { %v1338_v54 = vpack.c.bf16 %v1337_v53, %v1336_v52 }
 0x9b2   :  { %3345 = vmatmul.mubr.msk.bf16.vlgmr.msra.gmra.mxu0 %vm178_vm3, %v1338_v54 }
 0x9b3   :  { %3364 = vmatprep.mubr.msk.bf16.mxu0 %vm3668_vm4, %v3667_v6  ;;  %3361 = vmatpush3.bf16.msra.mxu0 %v3554_v48 }
 0x9b4   :  { %3362 = vmatprep.subr.bf16.mxu0 %v3667_v6 }
 0x9b7   :  { %3363 = vmatpush3.bf16.msra.mxu0 %v3555_v49 }
 0x9b8   :  { %3368 = vmatprep.subr.bf16.mxu0 %v3667_v6 }
 0xa72   :  { %v1397_v62 = vpop.f32.mrf.mxu0 }
 0xa73   :  { %v1398_v63 = vadd.f32 %v3018_v61, %v1397_v62 }
 0xa74   :  { %v3346_v20 = vpop.f32.mrf.mxu0 }
 0xa75   :  { %v1406_v24 = vmul.f32 0.044715, %v1398_v63  ;;  %v1404_v15 = vmul.f32 0.5, %v1398_v63 }
 0xa76   :  { %v1400_v18 = vpop.f32.mrf.mxu0 }
 0xa77   :  { %v1408_v1 = vmul.f32 %v1406_v24, %v1398_v63  ;;  %v1401_v2 = vadd.f32 %v3018_v61, %v1400_v18 }
 0xa78   :  { %v3347_v59 = vpop.f32.mrf.mxu0 }
 0xa79   :  { %v1410_v0 = vmul.f32 %v1408_v1, %v1398_v63  ;;  %v1407_v3 = vmul.f32 0.044715, %v1401_v2  ;;  %v1405_v16 = vmul.f32 0.5, %v1401_v2 }
 0xa7b   :  { %v1412_v4 = vadd.f32 %v1410_v0, %v1398_v63  ;;  %v1409_v5 = vmul.f32 %v1407_v3, %v1401_v2  ;;  %v3029_v63 = vld [vmem:[%s4442_s4 + $0x9] ss:$0 sm:$0xff] }
 0xa7d   :  { %v1414_v9 = vmul.f32 0.7978846, %v1412_v4  ;;  %v1411_v10 = vmul.f32 %v1409_v5, %v1401_v2 }
 0xa7f   :  { %3606 = vtanh.f32 %v1414_v9  ;;  %v1413_v11 = vadd.f32 %v1411_v10, %v1401_v2  ;;  %v3034_v2 = vld [vmem:[%s4442_s4 + $0xa] ss:$0 sm:$0xff] }
 0xa81   :  { %v1415_v26 = vmul.f32 0.7978846, %v1413_v11 }
 0xa83   :  { %3608 = vtanh.f32 %v1415_v26 }
 0xa8c   :  { %v3607_v12 = vpop.eup %3606 }
 0xa8d   :  { %v1418_v13 = vadd.f32 1.0, %v3607_v12 }
 0xa8f   :  { %v1420_v19 = vmul.f32 %v1418_v13, %v1404_v15 }
 0xa90   :  { %v3609_v14 = vpop.eup %3608 }
 0xa91   :  { %v1419_v17 = vadd.f32 1.0, %v3609_v14 }
 0xa93   :  { %v1421_v21 = vmul.f32 %v1419_v17, %v1405_v16 }
 0xa95   :  { %v1422_v25 = vpack.c.bf16 %v1421_v21, %v1420_v19 }
 0xa97   :  { %3357 = vmatmul.mubr.msk.bf16.vlgmr.msra.gmra.mxu1 %vm92_vm0, %v1422_v25 }
 0xa98   :  { %3376 = vmatprep.mubr.msk.bf16.mxu1 %vm3668_vm4, %v3667_v6 }
 0xb57   :  { %v1497_v30 = vpop.f32.mrf.mxu1 }
 0xb58   :  { %v1498_v31 = vadd.f32 %v3022_v27, %v1497_v30 }
 0xb59   :  { %v3358_v28 = vpop.f32.mrf.mxu1 }
 0xb5a   :  { %v1504_v33 = vadd.f32 %v1498_v31, %v1336_v52 }
 0xb5b   :  { %v1500_v23 = vpop.f32.mrf.mxu1 }
 0xb5c   :  { %v1501_v22 = vadd.f32 %v3022_v27, %v1500_v23  ;;  %v1508_v34 = vsel %vm178_vm3, %v1504_v33, 0.0 }
 0xb5d   :  { %1509 = vadd.xlane.f32.xlu0 %v1508_v34  ;;  %v3359_v35 = vpop.f32.mrf.mxu1 }
 0xb5e   :  { %v1505_v36 = vadd.f32 %v1501_v22, %v1337_v53 }
 0xb60   :  { %v1511_v37 = vsel %vm178_vm3, %v1505_v36, 0.0 }
 0xb61   :  { %1512 = vadd.xlane.f32.xlu1 %v1511_v37 }
 0xbe6   :  { %v1510_v38 = vpop.xlane.xlu0 %1509 }
 0xbe7   :  { %v1514_v39 = vmul.f32 0.03125, %v1510_v38 }
 0xbe9   :  { %v1516_v40 = vsub.f32 %v1504_v33, %v1514_v39 }
 0xbea   :  { %v1513_v41 = vpop.xlane.xlu1 %1512 }
 0xbeb   :  { %v1515_v42 = vmul.f32 0.03125, %v1513_v41  ;;  %v1518_v43 = vmul.f32 %v1516_v40, %v1516_v40 }
 0xbed   :  { %v1517_v44 = vsub.f32 %v1505_v36, %v1515_v42  ;;  %v1520_v45 = vsel %vm178_vm3, %v1518_v43, 0.0 }
 0xbee   :  { %1521 = vadd.xlane.f32.xlu0 %v1520_v45 }
 0xbef   :  { %v1519_v46 = vmul.f32 %v1517_v44, %v1517_v44 }
 0xbf1   :  { %v1523_v47 = vsel %vm178_vm3, %v1519_v46, 0.0 }
 0xbf2   :  { %1524 = vadd.xlane.f32.xlu1 %v1523_v47 }
 0xc77   :  { %v1522_v50 = vpop.xlane.xlu0 %1521 }
 0xc78   :  { %v1526_v51 = vmul.f32 0.03125, %v1522_v50 }
 0xc7a   :  { %v1528_v32 = vadd.f32 1e-12, %v1526_v51 }
 0xc7b   :  { %v1525_v52 = vpop.xlane.xlu1 %1524 }
 0xc7c   :  { %3610 = vrsqrt.f32 %v1528_v32  ;;  %v1527_v53 = vmul.f32 0.03125, %v1525_v52 }
 0xc7e   :  { %v1529_v54 = vadd.f32 1e-12, %v1527_v53 }
 0xc80   :  { %3612 = vrsqrt.f32 %v1529_v54 }
 0xc89   :  { %v3611_v55 = vpop.eup %3610 }
 0xc8a   :  { %v1532_v57 = vmul.f32 %v3611_v55, %v1516_v40 }
 0xc8c   :  { %v1538_v61 = vmul.f32 %v3028_v60, %v1532_v57 }
 0xc8d   :  { %v3613_v29 = vpop.eup %3612 }
 0xc8e   :  { %v1533_v62 = vmul.f32 %v3613_v29, %v1517_v44  ;;  %v4122_v24 = vadd.f32 %v3029_v63, %v1538_v61 }
 0xc90   :  { %v1539_v20 = vmul.f32 %v3028_v60, %v1533_v62 }
 0xc92   :  { %v4124_v18 = vadd.f32 %v3029_v63, %v1539_v20 }
 0xc94   :  { %v1546_v1 = vpack.c.bf16 %v4124_v18, %v4122_v24 }
 0xc96   :  { %3365 = vmatmul.mubr.msk.bf16.vlgmr.msra.gmra.mxu0 %vm178_vm3, %v1546_v1 }
 0xc97   :  { %3370 = vmatprep.mubr.msk.bf16.mxu0 %vm3668_vm4, %v3667_v6 }
 0xd56   :  { %v1606_v59 = vpop.f32.mrf.mxu0 }
 0xd57   :  { %v1607_v0 = vadd.f32 %v3034_v2, %v1606_v59 }
 0xd58   :  { %v3366_v3 = vpop.f32.mrf.mxu0 }
 0xd59   :  { %v3102_v4 = vpack.c.bf16 %v1607_v0, %v1607_v0 }
 0xd5a   :  { %v1609_v5 = vpop.f32.mrf.mxu0 }
 0xd5b   :  { %v1610_v9 = vadd.f32 %v3034_v2, %v1609_v5  ;;  %1619 = vrot.lane.b32.xlu0 %v3102_v4, %s3669_s15 }
 0xd5c   :  { %v3367_v10 = vpop.f32.mrf.mxu0 }
 0xd5d   :  { %v3103_v11 = vpack.c.bf16 %v1610_v9, %v1610_v9 }
 0xd5f   :  { %1625 = vrot.lane.b32.xlu0 %v3103_v11, %s3670_s16  ;;  %1621 = vrot.lane.b32.xlu1 %v3103_v11, %s3669_s15 }
 0xd63   :  { %1629 = vrot.lane.b32.xlu0 %v3103_v11, %s3671_s17  ;;  %1623 = vrot.lane.b32.xlu1 %v3102_v4, %s3670_s16 }
 0xd67   :  { %1679 = vrot.lane.b32.xlu0 %v3103_v11, %s3672_s1  ;;  %1627 = vrot.lane.b32.xlu1 %v3102_v4, %s3671_s17 }
 0xd6b   :  { %1631 = vrot.lane.b32.xlu1 %v3102_v4, %s3672_s1 }
 0xdcd   :  { %v1620_v26 = vpop.permute.xlu0 %1619 }
 0xdce   :  { %v4142_v12 = vcombine.low %v1620_v26, %v1620_v26 }
 0xdd0   :  { %1729 = vrot.lane.b32.xlu1 %v4142_v12, %s3672_s1 }
 0xdd1   :  { %v1626_v13 = vpop.permute.xlu0 %1625  ;;  %v1622_v14 = vpop.permute.xlu1 %1621 }
 0xdd2   :  { %v4146_v15 = vcombine.low %v1622_v14, %v1622_v14  ;;  %v4152_v19 = vcombine.low %v1626_v13, %v1626_v13 }
 0xdd4   :  { %1779 = vrot.lane.b32.xlu0 %v4146_v15, %s3672_s1 }
 0xdd5   :  { %v4150_v16 = vpop.permute.xlu0 %1629  ;;  %v1624_v17 = vpop.permute.xlu1 %1623 }
 0xdd6   :  { %v4154_v21 = vcombine.low %v1624_v17, %v1624_v17  ;;  %v4162_v30 = vcombine.low %v4150_v16, %v4150_v16 }
 0xdd8   :  { %1879 = vrot.lane.b32.xlu0 %v4152_v19, %s3672_s1  ;;  %1829 = vrot.lane.b32.xlu1 %v4154_v21, %s3672_s1 }
 0xdd9   :  { %v1680_v25 = vpop.permute.xlu0 %1679  ;;  %v1628_v27 = vpop.permute.xlu1 %1627 }
 0xdda   :  { %v1685_v31 = vsel %vm322_vm5, %v1680_v25, 0  ;;  %v4165_v28 = vcombine.low %v1628_v27, %v1628_v27 }
 0xddb   :  { %3375 = vmatpush3.bf16.xpose.msra.mxu1 %v1685_v31 }
 0xddc   :  { %1979 = vrot.lane.b32.xlu0 %v4162_v30, %s3672_s1  ;;  %1929 = vrot.lane.b32.xlu1 %v4165_v28, %s3672_s1 }
 0xddd   :  { %v1632_v33 = vpop.permute.xlu1 %1631  ;;  %3386 = vmatprep.subr.bf16.mxu1 %v3667_v6 }
 0xdde   :  { %v1637_v23 = vsel %vm322_vm5, %v1632_v33, 0 }
 0xddf   :  { %3369 = vmatpush3.bf16.xpose.msra.mxu0 %v1637_v23 }
 0xde0   :  { %2123 = vrot.lane.b32.xlu0 %v3102_v4, %s3673_s18  ;;  %2171 = vrot.lane.b32.xlu1 %v3103_v11, %s3673_s18 }
 0xde1   :  { %3380 = vmatprep.subr.bf16.mxu0 %v3667_v6 }
 0xde2   :  { %3377 = vmatmul.mubr.msk.bf16.vlgmr.msra.gmra.mxu1 %vm322_vm5, %v3103_v11 }
 0xde3   :  { %3388 = vmatprep.mubr.msk.bf16.mxu1 %vm3668_vm4, %v3667_v6 }
 0xde6   :  { %3371 = vmatmul.mubr.msk.bf16.vlgmr.msra.gmra.mxu0 %vm322_vm5, %v3102_v4 }
 0xde7   :  { %3382 = vmatprep.mubr.msk.bf16.mxu0 %vm3668_vm4, %v3667_v6 }
 0xe42   :  { %v1730_v22 = vpop.permute.xlu1 %1729 }
 0xe43   :  { %v1735_v34 = vsel %vm322_vm5, %v1730_v22, 0 }
 0xe44   :  { %3381 = vmatpush3.bf16.xpose.msra.mxu0 %v1735_v34 }
 0xe45   :  { %3392 = vmatprep.subr.bf16.mxu0 %v3667_v6 }
 0xe46   :  { %v1780_v35 = vpop.permute.xlu0 %1779 }
 0xe47   :  { %v1785_v36 = vsel %vm322_vm5, %v1780_v35, 0 }
 0xe48   :  { %3387 = vmatpush3.bf16.xpose.msra.mxu1 %v1785_v36 }
 0xe49   :  { %3398 = vmatprep.subr.bf16.mxu1 %v3667_v6 }
 0xe4a   :  { %v1830_v37 = vpop.permute.xlu1 %1829  ;;  %v1880_v39 = vpop.permute.xlu0 %1879 }
 0xe4b   :  { %v1835_v38 = vsel %vm322_vm5, %v1830_v37, 0  ;;  %3383 = vmatmul.mubr.msk.bf16.vlgmr.msra.gmra.mxu0 %vm322_vm5, %v1620_v26  ;;  %v1885_v40 = vsel %vm322_vm5, %v1880_v39, 0 }
 0xe4c   :  { %3393 = vmatpush3.bf16.xpose.msra.mxu0 %v1835_v38  ;;  %3394 = vmatprep.mubr.msk.bf16.mxu0 %vm3668_vm4, %v3667_v6 }
 0xe4d   :  { %3404 = vmatprep.subr.bf16.mxu0 %v3667_v6 }
 0xe4e   :  { %v1930_v41 = vpop.permute.xlu1 %1929  ;;  %v1980_v42 = vpop.permute.xlu0 %1979 }
 0xe4f   :  { %3389 = vmatmul.mubr.msk.bf16.vlgmr.msra.gmra.mxu1 %vm322_vm5, %v1622_v14  ;;  %v1935_v43 = vsel %vm322_vm5, %v1930_v41, 0  ;;  %v1985_v44 = vsel %vm322_vm5, %v1980_v42, 0 }
 0xe50   :  { %3399 = vmatpush3.bf16.xpose.msra.mxu1 %v1885_v40  ;;  %3400 = vmatprep.mubr.msk.bf16.mxu1 %vm3668_vm4, %v3667_v6 }
 0xe51   :  { %3410 = vmatprep.subr.bf16.mxu1 %v3667_v6 }
 0xe52   :  { %v2124_v45 = vpop.permute.xlu0 %2123  ;;  %v2172_v47 = vpop.permute.xlu1 %2171 }
 0xe53   :  { %3395 = vmatmul.mubr.msk.bf16.vlgmr.msra.gmra.mxu0 %vm322_vm5, %v1624_v17  ;;  %v2129_v46 = vsel %vm818_vm6, %v2124_v45, 0  ;;  %v2177_v48 = vsel %vm818_vm6, %v2172_v47, 0 }
 0xe54   :  { %3405 = vmatpush3.bf16.xpose.msra.mxu0 %v1935_v43  ;;  %3406 = vmatprep.mubr.msk.bf16.mxu0 %vm3668_vm4, %v3667_v6 }
 0xe55   :  { %3416 = vmatprep.subr.bf16.mxu0 %v3667_v6 }
 0xe57   :  { %3401 = vmatmul.mubr.msk.bf16.vlgmr.msra.gmra.mxu1 %vm322_vm5, %v1626_v13 }
 0xe58   :  { %3411 = vmatpush3.bf16.xpose.msra.mxu1 %v1985_v44  ;;  %3412 = vmatprep.mubr.msk.bf16.mxu1 %vm3668_vm4, %v3667_v6 }
 0xe59   :  { %3422 = vmatprep.subr.bf16.mxu1 %v3667_v6 }
 0xe5b   :  { %3407 = vmatmul.mubr.msk.bf16.vlgmr.msra.gmra.mxu0 %vm322_vm5, %v1628_v27 }
 0xe5c   :  { %3417 = vmatpush3.bf16.msra.mxu0 %v2129_v46  ;;  %3418 = vmatprep.mubr.msk.bf16.mxu0 %vm3668_vm4, %v3667_v6 }
 0xe5d   :  { %3428 = vmatprep.subr.bf16.mxu0 %v3667_v6 }
 0xe5f   :  { %3413 = vmatmul.mubr.msk.bf16.vlgmr.msra.gmra.mxu1 %vm322_vm5, %v4150_v16 }
 0xe60   :  { %3423 = vmatpush3.bf16.msra.mxu1 %v2177_v48  ;;  %3424 = vmatprep.mubr.msk.bf16.mxu1 %vm3668_vm4, %v3667_v6 }
 0xe61   :  { %3434 = vmatprep.subr.bf16.mxu1 %v3667_v6 }
 0xea2   :  { %v1721_v49 = vpop.f32.mrf.mxu1 }
 0xea3   :  { %v1722_v50 = vadd.f32 %v1721_v49, %v3919_v58 }
 0xea4   :  { %v3378_v51 = vpop.f32.mrf.mxu1 }
 0xea5   :  { %v2030_v32 = vsel %vm322_vm5, %v1722_v50, -inf }
 0xea6   :  { %v1673_v52 = vpop.f32.mrf.mxu0  ;;  %2031 = vmax.xlane.f32.xlu0 %v2030_v32  ;;  %v1724_v53 = vpop.f32.mrf.mxu1 }
 0xea7   :  { %v1674_v54 = vadd.f32 %v1673_v52, %v3916_v56 }
 0xea8   :  { %v3372_v55 = vpop.f32.mrf.mxu0  ;;  %v3379_v57 = vpop.f32.mrf.mxu1 }
 0xea9   :  { %v2027_v60 = vsel %vm322_vm5, %v1674_v54, -inf }
 0xeaa   :  { %2028 = vmax.xlane.f32.xlu1 %v2027_v60  ;;  %v1676_v29 = vpop.f32.mrf.mxu0 }
 0xeac   :  { %v3373_v61 = vpop.f32.mrf.mxu0 }
 0xf0b   :  { %v1771_v62 = vpop.f32.mrf.mxu0 }
 0xf0c   :  { %v1772_v63 = vadd.f32 %v1771_v62, %v3916_v56 }
 0xf0d   :  { %v3384_v20 = vpop.f32.mrf.mxu0 }
 0xf0e   :  { %v2033_v1 = vsel %vm322_vm5, %v1772_v63, -inf }
 0xf0f   :  { %v1774_v2 = vpop.f32.mrf.mxu0  ;;  %2034 = vmax.xlane.f32.xlu0 %v2033_v1  ;;  %v1821_v59 = vpop.f32.mrf.mxu1 }
 0xf10   :  { %v1822_v0 = vadd.f32 %v1821_v59, %v3919_v58 }
 0xf11   :  { %v3385_v3 = vpop.f32.mrf.mxu0  ;;  %v3390_v4 = vpop.f32.mrf.mxu1 }
 0xf12   :  { %v2036_v5 = vsel %vm322_vm5, %v1822_v0, -inf }
 0xf13   :  { %v1871_v9 = vpop.f32.mrf.mxu0  ;;  %2037 = vmax.xlane.f32.xlu1 %v2036_v5  ;;  %v1824_v10 = vpop.f32.mrf.mxu1 }
 0xf14   :  { %v4226_v11 = vadd.f32 %v1871_v9, %v3916_v56 }
 0xf15   :  { %v3391_v26 = vpop.f32.mrf.mxu1  ;;  %v3396_v13 = vpop.f32.mrf.mxu0 }
 0xf16   :  { %v2039_v14 = vsel %vm322_vm5, %v4226_v11, -inf }
 0xf17   :  { %v1874_v16 = vpop.f32.mrf.mxu0  ;;  %2040 = vmax.xlane.f32.xlu0 %v2039_v14  ;;  %v1921_v17 = vpop.f32.mrf.mxu1 }
 0xf18   :  { %v1922_v25 = vadd.f32 %v1921_v17, %v3919_v58 }
 0xf19   :  { %v3397_v27 = vpop.f32.mrf.mxu0  ;;  %v3402_v31 = vpop.f32.mrf.mxu1 }
 0xf1a   :  { %v2042_v33 = vsel %vm322_vm5, %v1922_v25, -inf }
 0xf1b   :  { %v1971_v23 = vpop.f32.mrf.mxu0  ;;  %2043 = vmax.xlane.f32.xlu1 %v2042_v33  ;;  %v1924_v22 = vpop.f32.mrf.mxu1 }
 0xf1c   :  { %v4233_v34 = vadd.f32 %v1971_v23, %v3916_v56 }
 0xf1d   :  { %v3403_v35 = vpop.f32.mrf.mxu1  ;;  %v3408_v36 = vpop.f32.mrf.mxu0 }
 0xf1e   :  { %v2045_v37 = vsel %vm322_vm5, %v4233_v34, -inf }
 0xf1f   :  { %v1974_v38 = vpop.f32.mrf.mxu0  ;;  %2046 = vmax.xlane.f32.xlu0 %v2045_v37  ;;  %v2021_v39 = vpop.f32.mrf.mxu1 }
 0xf20   :  { %v2022_v40 = vadd.f32 %v2021_v39, %v3919_v58 }
 0xf21   :  { %v3409_v41 = vpop.f32.mrf.mxu0  ;;  %v3414_v42 = vpop.f32.mrf.mxu1 }
 0xf22   :  { %v2048_v43 = vsel %vm322_vm5, %v2022_v40, -inf }
 0xf23   :  { %2049 = vmax.xlane.f32.xlu1 %v2048_v43  ;;  %v2024_v44 = vpop.f32.mrf.mxu1 }
 0xf25   :  { %v3415_v45 = vpop.f32.mrf.mxu1 }
 0xf2f   :  { %v2032_v47 = vpop.xlane.xlu0 %2031 }
 0xf30   :  { %v2052_v48 = vsub.f32 %v1722_v50, %v2032_v47 }
 0xf32   :  { %v2061_v51 = vmul.f32 1.442695, %v2052_v48 }
 0xf33   :  { %v2029_v56 = vpop.xlane.xlu1 %2028 }
 0xf34   :  { %2219 = vrot.lane.b32.xlu1 %v4142_v12, %s3673_s18  ;;  %v2051_v46 = vsub.f32 %v1674_v54, %v2029_v56 }
 0xf35   :  { %2267 = vrot.lane.b32.xlu0 %v4146_v15, %s3673_s18 }
 0xf36   :  { %v2059_v49 = vmul.f32 1.442695, %v2051_v46 }
 0xf38   :  { %3614 = vpow2.f32 %v2059_v49 }
 0xf39   :  { %3616 = vpow2.f32 %v2061_v51 }
 0xf45   :  { %v3615_v58 = vpop.eup %3614 }
 0xf46   :  { %v2075_v32 = vsel %vm322_vm5, %v3615_v58, 0.0  ;;  %v3617_v52 = vpop.eup %3616 }
 0xf47   :  { %v2078_v53 = vsel %vm322_vm5, %v3617_v52, 0.0 }
 0xf54   :  { %2076 = vadd.xlane.f32.xlu0 %v2075_v32 }
 0xf58   :  { %2079 = vadd.xlane.f32.xlu1 %v2078_v53 }
 0xf69   :  { %2315 = vrot.lane.b32.xlu1 %v4154_v21, %s3673_s18 }
 0xf98   :  { %v2035_v12 = vpop.xlane.xlu0 %2034 }
 0xf99   :  { %v2053_v15 = vsub.f32 %v1772_v63, %v2035_v12 }
 0xf9b   :  { %v2063_v54 = vmul.f32 1.442695, %v2053_v15 }
 0xf9c   :  { %v2038_v55 = vpop.xlane.xlu1 %2037 }
 0xf9d   :  { %3618 = vpow2.f32 %v2063_v54  ;;  %v2054_v50 = vsub.f32 %v1822_v0, %v2038_v55 }
 0xf9f   :  { %v2065_v57 = vmul.f32 1.442695, %v2054_v50 }
 0xfa0   :  { %v2041_v9 = vpop.xlane.xlu0 %2040 }
 0xfa1   :  { %3620 = vpow2.f32 %v2065_v57  ;;  %v2055_v10 = vsub.f32 %v4226_v11, %v2041_v9 }
 0xfa3   :  { %v2067_v13 = vmul.f32 1.442695, %v2055_v10 }
 0xfa4   :  { %v2044_v60 = vpop.xlane.xlu1 %2043 }
 0xfa5   :  { %v2056_v29 = vsub.f32 %v1922_v25, %v2044_v60 }
 0xfa7   :  { %v2069_v61 = vmul.f32 1.442695, %v2056_v29 }
 0xfa8   :  { %v2047_v26 = vpop.xlane.xlu0 %2046 }
 0xfa9   :  { %3622 = vpow2.f32 %v2069_v61  ;;  %v2057_v14 = vsub.f32 %v4233_v34, %v2047_v26 }
 0xfaa   :  { %v4247_v62 = vpop.eup %3618 }
 0xfab   :  { %v2081_v20 = vsel %vm322_vm5, %v4247_v62, 0.0  ;;  %v2071_v16 = vmul.f32 1.442695, %v2057_v14 }
 0xfac   :  { %2082 = vadd.xlane.f32.xlu0 %v2081_v20  ;;  %v2050_v1 = vpop.xlane.xlu1 %2049  ;;  %v2268_v17 = vpop.permute.xlu0 %2267 }
 0xfad   :  { %v2058_v21 = vsub.f32 %v2022_v40, %v2050_v1  ;;  %v2273_v39 = vsel %vm818_vm6, %v2268_v17, 0 }
 0xfae   :  { %v4251_v2 = vpop.eup %3620 }
 0xfaf   :  { %v2073_v63 = vmul.f32 1.442695, %v2058_v21  ;;  %v2084_v59 = vsel %vm322_vm5, %v4251_v2, 0.0 }
 0xfb0   :  { %2085 = vadd.xlane.f32.xlu1 %v2084_v59  ;;  %v2220_v27 = vpop.permute.xlu1 %2219 }
 0xfb1   :  { %3624 = vpow2.f32 %v2073_v63  ;;  %v2225_v36 = vsel %vm818_vm6, %v2220_v27, 0 }
 0xfb2   :  { %3626 = vpow2.f32 %v2067_v13 }
 0xfb3   :  { %3628 = vpow2.f32 %v2071_v16 }
 0xfb6   :  { %v4255_v0 = vpop.eup %3622 }
 0xfb7   :  { %v2090_v3 = vsel %vm322_vm5, %v4255_v0, 0.0 }
 0xfb8   :  { %2091 = vadd.xlane.f32.xlu1 %v2090_v3 }
 0xfbe   :  { %v4259_v4 = vpop.eup %3624 }
 0xfbf   :  { %v2096_v5 = vsel %vm322_vm5, %v4259_v4, 0.0  ;;  %v4269_v25 = vpop.eup %3626 }
 0xfc0   :  { %2097 = vadd.xlane.f32.xlu1 %v2096_v5  ;;  %v4273_v11 = vpop.eup %3628 }
 0xfc1   :  { %v2093_v23 = vsel %vm322_vm5, %v4273_v11, 0.0 }
 0xfc2   :  { %2363 = vrot.lane.b32.xlu0 %v4152_v19, %s3673_s18  ;;  %v2087_v19 = vsel %vm322_vm5, %v4269_v25, 0.0 }
 0xfd1   :  { %2411 = vrot.lane.b32.xlu1 %v4165_v28, %s3673_s18 }
 0xfdd   :  { %v2077_v31 = vpop.xlane.xlu0 %2076 }
 0xfde   :  { %3630 = vrcp.f32 %v2077_v31 }
 0xfe1   :  { %2088 = vadd.xlane.f32.xlu0 %v2087_v19  ;;  %v2080_v33 = vpop.xlane.xlu1 %2079 }
 0xfe2   :  { %3632 = vrcp.f32 %v2080_v33 }
 0xfe5   :  { %2094 = vadd.xlane.f32.xlu0 %v2093_v23  ;;  %v2316_v40 = vpop.permute.xlu1 %2315 }
 0xfe6   :  { %v2321_v47 = vsel %vm818_vm6, %v2316_v40, 0  ;;  %v3557_v40 = vld [vmem:[%s4444_s6 + $0x10] sm:$0xff]  }
 0xfeb   :  { %v3631_v28 = vpop.eup %3630 }
 0xfec   :  { %v2107_v22 = vmul.f32 %v3631_v28, %v3615_v58 }
 0xfee   :  { %v2115_v34 = vpack.c.bf16 %v2107_v22, %v2107_v22 }
 0xfef   :  { %v3633_v35 = vpop.eup %3632 }
 0xff0   :  { %3419 = vmatmul.mubr.msk.bf16.vlgmr.msra.gmra.mxu0 %vm322_vm5, %v2115_v34  ;;  %v2108_v37 = vmul.f32 %v3633_v35, %v3617_v52  ;;  %v3556_v34 = vld [vmem:[%s4444_s6 + $0x18] sm:$0xff]  }
 0xff1   :  { %3429 = vmatpush3.bf16.msra.mxu0 %v2225_v36  ;;  %3430 = vmatprep.mubr.msk.bf16.mxu0 %vm3668_vm4, %v3667_v6 }
 0xff2   :  { %v2116_v38 = vpack.c.bf16 %v2108_v37, %v2108_v37  ;;  %3440 = vmatprep.subr.bf16.mxu0 %v3667_v6 }
 0xff4   :  { %3425 = vmatmul.mubr.msk.bf16.vlgmr.msra.gmra.mxu1 %vm322_vm5, %v2116_v38 }
 0xff5   :  { %3435 = vmatpush3.bf16.msra.mxu1 %v2273_v39  ;;  %3436 = vmatprep.mubr.msk.bf16.mxu1 %vm3668_vm4, %v3667_v6 }
 0xff6   :  { %3446 = vmatprep.subr.bf16.mxu1 %v3667_v6 }
 0xffb   :  { %2459 = vrot.lane.b32.xlu0 %v4162_v30, %s3673_s18 }
0x1035   :  { %v2083_v41 = vpop.xlane.xlu0 %2082 }
0x1036   :  { %3634 = vrcp.f32 %v2083_v41 }
0x1039   :  { %v2086_v42 = vpop.xlane.xlu1 %2085  ;;  %v2364_v49 = vpop.permute.xlu0 %2363 }
0x103a   :  { %3636 = vrcp.f32 %v2086_v42  ;;  %v2369_v51 = vsel %vm818_vm6, %v2364_v49, 0 }
0x1041   :  { %v2092_v43 = vpop.xlane.xlu1 %2091 }
0x1042   :  { %3638 = vrcp.f32 %v2092_v43 }
0x1043   :  { %v3635_v44 = vpop.eup %3634 }
0x1044   :  { %v2109_v45 = vmul.f32 %v3635_v44, %v4247_v62 }
0x1046   :  { %v2117_v56 = vpack.c.bf16 %v2109_v45, %v2109_v45 }
0x1047   :  { %v3637_v46 = vpop.eup %3636 }
0x1048   :  { %3431 = vmatmul.mubr.msk.bf16.vlgmr.msra.gmra.mxu0 %vm322_vm5, %v2117_v56  ;;  %v2110_v48 = vmul.f32 %v3637_v46, %v4251_v2 }
0x1049   :  { %3441 = vmatpush3.bf16.msra.mxu0 %v2321_v47  ;;  %3442 = vmatprep.mubr.msk.bf16.mxu0 %vm3668_vm4, %v3667_v6  ;;  %v2098_v53 = vpop.xlane.xlu1 %2097 }
0x104a   :  { %v2118_v30 = vpack.c.bf16 %v2110_v48, %v2110_v48  ;;  %3452 = vmatprep.subr.bf16.mxu0 %v3667_v6  ;;  %3640 = vrcp.f32 %v2098_v53 }
0x104c   :  { %3437 = vmatmul.mubr.msk.bf16.vlgmr.msra.gmra.mxu1 %vm322_vm5, %v2118_v30 }
0x104d   :  { %3447 = vmatpush3.bf16.msra.mxu1 %v2369_v51  ;;  %3448 = vmatprep.mubr.msk.bf16.mxu1 %vm3668_vm4, %v3667_v6  ;;  %v2412_v62 = vpop.permute.xlu1 %2411 }
0x104e   :  { %3458 = vmatprep.subr.bf16.mxu1 %v3667_v6  ;;  %v2417_v21 = vsel %vm818_vm6, %v2412_v62, 0  ;;  %v3066_v62 = vld [vmem:[%s4442_s4 + $0xb] ss:$0 sm:$0xff] }
0x104f   :  { %v3639_v58 = vpop.eup %3638 }
0x1050   :  { %v2112_v32 = vmul.f32 %v3639_v58, %v4255_v0 }
0x1052   :  { %v2120_v52 = vpack.c.bf16 %v2112_v32, %v2112_v32 }
0x1054   :  { %3449 = vmatmul.mubr.msk.bf16.vlgmr.msra.gmra.mxu1 %vm322_vm5, %v2120_v52 }
0x1055   :  { %3460 = vmatprep.mubr.msk.bf16.mxu1 %vm3668_vm4, %v3667_v6 }
0x1057   :  { %v3641_v15 = vpop.eup %3640 }
0x1058   :  { %v2114_v55 = vmul.f32 %v3641_v15, %v4259_v4 }
0x105a   :  { %v2122_v60 = vpack.c.bf16 %v2114_v55, %v2114_v55 }
0x106a   :  { %v2089_v12 = vpop.xlane.xlu0 %2088 }
0x106b   :  { %3642 = vrcp.f32 %v2089_v12 }
0x106e   :  { %v2095_v54 = vpop.xlane.xlu0 %2094 }
0x106f   :  { %3644 = vrcp.f32 %v2095_v54 }
0x1072   :  { %v2460_v50 = vpop.permute.xlu0 %2459 }
0x1073   :  { %v2465_v57 = vsel %vm818_vm6, %v2460_v50, 0 }
0x1074   :  { %3459 = vmatpush3.bf16.msra.mxu1 %v2465_v57 }
0x1075   :  { %3472 = vmatprep.subr.bf16.mxu1 %v3667_v6 }
0x1077   :  { %3461 = vmatmul.mubr.msk.bf16.vlgmr.msra.gmra.mxu1 %vm322_vm5, %v2122_v60 }
0x1078   :  { %v3643_v29 = vpop.eup %3642  ;;  %3476 = vmatprep.mubr.msk.bf16.mxu1 %vm3668_vm4, %v3667_v6 }
0x1079   :  { %v2111_v61 = vmul.f32 %v3643_v29, %v4269_v25 }
0x107b   :  { %v2119_v20 = vpack.c.bf16 %v2111_v61, %v2111_v61 }
0x107c   :  { %v3645_v1 = vpop.eup %3644 }
0x107d   :  { %3443 = vmatmul.mubr.msk.bf16.vlgmr.msra.gmra.mxu0 %vm322_vm5, %v2119_v20  ;;  %v2113_v2 = vmul.f32 %v3645_v1, %v4273_v11 }
0x107e   :  { %3453 = vmatpush3.bf16.msra.mxu0 %v2417_v21  ;;  %3454 = vmatprep.mubr.msk.bf16.mxu0 %vm3668_vm4, %v3667_v6 }
0x107f   :  { %3464 = vmatprep.subr.bf16.mxu0 %v3667_v6  ;;  %v2121_v63 = vpack.c.bf16 %v2113_v2, %v2113_v2 }
0x1085   :  { %3455 = vmatmul.mubr.msk.bf16.vlgmr.msra.gmra.mxu0 %vm322_vm5, %v2121_v63 }
0x1086   :  { %3468 = vmatprep.mubr.msk.bf16.mxu0 %vm3668_vm4, %v3667_v6  ;;  %3465 = vmatpush3.bf16.msra.mxu0 %v3556_v34 }
0x1087   :  { %3466 = vmatprep.subr.bf16.mxu0 %v3667_v6 }
0x108a   :  { %3467 = vmatpush3.bf16.msra.mxu0 %v3557_v40 }
0x108b   :  { %3480 = vmatprep.subr.bf16.mxu0 %v3667_v6 }
0x10b0   :  { %v2165_v59 = vpop.f32.mrf.mxu0 }
0x10b2   :  { %v3420_v0 = vpop.f32.mrf.mxu0 }
0x10b4   :  { %v2168_v3 = vpop.f32.mrf.mxu0  ;;  %v2213_v4 = vpop.f32.mrf.mxu1 }
0x10b6   :  { %v3421_v5 = vpop.f32.mrf.mxu0  ;;  %v3426_v9 = vpop.f32.mrf.mxu1 }
0x10b8   :  { %v2216_v10 = vpop.f32.mrf.mxu1 }
0x10ba   :  { %v3427_v26 = vpop.f32.mrf.mxu1 }
0x1108   :  { %v2261_v13 = vpop.f32.mrf.mxu0 }
0x110a   :  { %v3432_v14 = vpop.f32.mrf.mxu0 }
0x110c   :  { %v2264_v16 = vpop.f32.mrf.mxu0  ;;  %v2309_v17 = vpop.f32.mrf.mxu1 }
0x110d   :  { %v3529_v25 = vpack.i.bf16 %v2309_v17, %v2261_v13 }
0x110e   :  { %v3433_v27 = vpop.f32.mrf.mxu0  ;;  %v3438_v31 = vpop.f32.mrf.mxu1 }
0x110f   :  { %3530 = vrot.lane.b32.xlu1 %v3529_v25, %s3674_s2 }
0x1110   :  { %v2312_v19 = vpop.f32.mrf.mxu1 }
0x1111   :  { %v3558_v19 = vld [vmem:[%s4445_s7 + $0x18] sm:$0xff]  }
0x1112   :  { %v3439_v11 = vpop.f32.mrf.mxu1  ;;  %3473 = vmatpush3.bf16.msra.mxu1 %v3558_v19 }
0x1113   :  { %v3559_v11 = vld [vmem:[%s4445_s7 + $0x10] sm:$0xff]   ;;  %3474 = vmatprep.subr.bf16.mxu1 %v3667_v6 }
0x1114   :  { %v2405_v33 = vpop.f32.mrf.mxu1 }
0x1116   :  { %v3450_v23 = vpop.f32.mrf.mxu1  ;;  %3475 = vmatpush3.bf16.msra.mxu1 %v3559_v11 }
0x1117   :  { %3492 = vmatprep.subr.bf16.mxu1 %v3667_v6 }
0x1118   :  { %v2408_v28 = vpop.f32.mrf.mxu1 }
0x111a   :  { %v3451_v22 = vpop.f32.mrf.mxu1 }
0x1137   :  { %v2501_v35 = vpop.f32.mrf.mxu1 }
0x1139   :  { %v3462_v36 = vpop.f32.mrf.mxu1 }
0x113b   :  { %v2504_v37 = vpop.f32.mrf.mxu1 }
0x113d   :  { %v2357_v38 = vpop.f32.mrf.mxu0  ;;  %v3463_v39 = vpop.f32.mrf.mxu1 }
0x113e   :  { %v3534_v41 = vpack.i.bf16 %v2405_v33, %v2357_v38  ;;  %v3070_v38 = vld [vmem:[%s4442_s4 + $0xc] ss:$0 sm:$0xff] }
0x113f   :  { %v3444_v42 = vpop.f32.mrf.mxu0 }
0x1140   :  { %3535 = vrot.lane.b32.xlu0 %v3534_v41, %s3675_s26  ;;  %v3071_v42 = vld [vmem:[%s4442_s4 + $0xd] ss:$0 sm:$0xff] }
0x1141   :  { %v2360_v43 = vpop.f32.mrf.mxu0 }
0x1143   :  { %v3445_v44 = vpop.f32.mrf.mxu0 }
0x1145   :  { %v2453_v45 = vpop.f32.mrf.mxu0 }
0x1146   :  { %v3539_v56 = vpack.i.bf16 %v2501_v35, %v2453_v45 }
0x1147   :  { %v3456_v46 = vpop.f32.mrf.mxu0 }
0x1148   :  { %3540 = vrot.lane.b32.xlu1 %v3539_v56, %s3676_s27  ;;  %v3560_v46 = vld [vmem:[%s4446_s8 + $0x38] sm:$0xff]  }
0x1149   :  { %v2456_v47 = vpop.f32.mrf.mxu0 }
0x114a   :  { %v3561_v47 = vld [vmem:[%s4446_s8 + $0x30] sm:$0xff]  }
0x114b   :  { %v3457_v48 = vpop.f32.mrf.mxu0 }
0x114c   :  { %v3562_v48 = vld [vmem:[%s4446_s8 + $0x28] sm:$0xff]  }
0x1181   :  { %v3531_v49 = vpop.permute.xlu1 %3530 }
0x1182   :  { %v3533_v51 = vunpack.i.h.bf16 %v3531_v49  ;;  %v3532_v58 = vunpack.i.l.bf16 %v3531_v49  ;;  %v3563_v49 = vld [vmem:[%s4446_s8 + $0x20] sm:$0xff]  }
0x1184   :  { %v2532_v12 = vsel %vm322_vm5, %v2213_v4, %v3533_v51  ;;  %v2531_v15 = vsel %vm322_vm5, %v2165_v59, %v3532_v58 }
0x11b2   :  { %v3536_v30 = vpop.permute.xlu0 %3535 }
0x11b3   :  { %v3538_v32 = vunpack.i.h.bf16 %v3536_v30  ;;  %v3537_v52 = vunpack.i.l.bf16 %v3536_v30  ;;  %v3076_v30 = vld [vmem:[%s4442_s4 + $0xe] ss:$0 sm:$0xff] }
0x11b5   :  { %v2534_v50 = vsel %vm1224_vm7, %v2532_v12, %v3538_v32  ;;  %v2533_v57 = vsel %vm1224_vm7, %v2531_v15, %v3537_v52 }
0x11ba   :  { %v3541_v53 = vpop.permute.xlu1 %3540 }
0x11bb   :  { %v3543_v54 = vunpack.i.h.bf16 %v3541_v53  ;;  %v3542_v55 = vunpack.i.l.bf16 %v3541_v53 }
0x11bd   :  { %v2536_v60 = vsel %vm1227_vm8, %v2534_v50, %v3543_v54  ;;  %v2535_v29 = vsel %vm1227_vm8, %v2533_v57, %v3542_v55 }
0x11be   :  { %v2537_v61 = vpack.c.bf16 %v2536_v60, %v2535_v29 }
0x11c0   :  { %3469 = vmatmul.mubr.msk.bf16.vlgmr.msra.gmra.mxu0 %vm178_vm3, %v2537_v61 }
0x11c1   :  { %3488 = vmatprep.mubr.msk.bf16.mxu0 %vm3668_vm4, %v3667_v6  ;;  %3481 = vmatpush3.bf16.msra.mxu0 %v3560_v46 }
0x11c2   :  { %3482 = vmatprep.subr.bf16.mxu0 %v3667_v6 }
0x11c5   :  { %3483 = vmatpush3.bf16.msra.mxu0 %v3561_v47 }
0x11c6   :  { %3484 = vmatprep.subr.bf16.mxu0 %v3667_v6 }
0x11c9   :  { %3485 = vmatpush3.bf16.msra.mxu0 %v3562_v48  ;;  %v3094_v48 = vld [vmem:[%s4442_s4 + $0x10] ss:$0 sm:$0xff] }
0x11ca   :  { %3486 = vmatprep.subr.bf16.mxu0 %v3667_v6 }
0x11cd   :  { %3487 = vmatpush3.bf16.msra.mxu0 %v3563_v49 }
0x1280   :  { %v2597_v20 = vpop.f32.mrf.mxu0 }
0x1281   :  { %v2598_v1 = vadd.f32 %v3066_v62, %v2597_v20 }
0x1282   :  { %v3470_v21 = vpop.f32.mrf.mxu0 }
0x1283   :  { %v2604_v2 = vadd.f32 %v2598_v1, %v4122_v24 }
0x1284   :  { %v2600_v63 = vpop.f32.mrf.mxu0 }
0x1285   :  { %v2601_v59 = vadd.f32 %v3066_v62, %v2600_v63  ;;  %v2608_v0 = vsel %vm178_vm3, %v2604_v2, 0.0 }
0x1286   :  { %2609 = vadd.xlane.f32.xlu0 %v2608_v0  ;;  %v3471_v3 = vpop.f32.mrf.mxu0 }
0x1287   :  { %v2605_v4 = vadd.f32 %v2601_v59, %v4124_v18 }
0x1289   :  { %v2611_v5 = vsel %vm178_vm3, %v2605_v4, 0.0 }
0x128a   :  { %2612 = vadd.xlane.f32.xlu1 %v2611_v5 }
0x130f   :  { %v2610_v9 = vpop.xlane.xlu0 %2609 }
0x1310   :  { %v2614_v10 = vmul.f32 0.03125, %v2610_v9  ;;  %v3088_v9 = vld [vmem:[%s4442_s4 + $0xf] ss:$0 sm:$0xff] }
0x1312   :  { %v2616_v26 = vsub.f32 %v2604_v2, %v2614_v10 }
0x1313   :  { %v2613_v13 = vpop.xlane.xlu1 %2612 }
0x1314   :  { %v2615_v14 = vmul.f32 0.03125, %v2613_v13  ;;  %v2618_v16 = vmul.f32 %v2616_v26, %v2616_v26 }
0x1316   :  { %v2617_v17 = vsub.f32 %v2605_v4, %v2615_v14  ;;  %v2620_v25 = vsel %vm178_vm3, %v2618_v16, 0.0 }
0x1317   :  { %2621 = vadd.xlane.f32.xlu0 %v2620_v25 }
0x1318   :  { %v2619_v27 = vmul.f32 %v2617_v17, %v2617_v17 }
0x131a   :  { %v2623_v31 = vsel %vm178_vm3, %v2619_v27, 0.0 }
0x131b   :  { %2624 = vadd.xlane.f32.xlu0 %v2623_v31 }
0x13a0   :  { %v2622_v33 = vpop.xlane.xlu0 %2621 }
0x13a1   :  { %v2626_v23 = vmul.f32 0.03125, %v2622_v33 }
0x13a3   :  { %v2628_v28 = vadd.f32 1e-12, %v2626_v23 }
0x13a4   :  { %v2625_v22 = vpop.xlane.xlu0 %2624 }
0x13a5   :  { %3646 = vrsqrt.f32 %v2628_v28  ;;  %v2627_v34 = vmul.f32 0.03125, %v2625_v22 }
0x13a7   :  { %v2629_v35 = vadd.f32 1e-12, %v2627_v34 }
0x13a9   :  { %3648 = vrsqrt.f32 %v2629_v35 }
0x13b2   :  { %v3647_v36 = vpop.eup %3646 }
0x13b3   :  { %v2632_v37 = vmul.f32 %v3647_v36, %v2616_v26 }
0x13b5   :  { %v2638_v41 = vmul.f32 %v3070_v38, %v2632_v37 }
0x13b6   :  { %v3649_v39 = vpop.eup %3648 }
0x13b7   :  { %v2633_v40 = vmul.f32 %v3649_v39, %v2617_v17  ;;  %v2644_v44 = vadd.f32 %v3071_v42, %v2638_v41  ;;  %v3564_v39 = vld [vmem:[%s4447_s9 + $0x8] sm:$0xff]  }
0x13b9   :  { %v2639_v43 = vmul.f32 %v3070_v38, %v2633_v40  ;;  %v3565_v40 = vld [vmem:[%s4447_s9] sm:$0xff]  }
0x13bb   :  { %v2645_v45 = vadd.f32 %v3071_v42, %v2639_v43 }
0x13bd   :  { %v2646_v56 = vpack.c.bf16 %v2645_v45, %v2644_v44 }
0x13bf   :  { %3477 = vmatmul.mubr.msk.bf16.vlgmr.msra.gmra.mxu1 %vm178_vm3, %v2646_v56 }
0x13c0   :  { %3496 = vmatprep.mubr.msk.bf16.mxu1 %vm3668_vm4, %v3667_v6  ;;  %3493 = vmatpush3.bf16.msra.mxu1 %v3564_v39 }
0x13c1   :  { %3494 = vmatprep.subr.bf16.mxu1 %v3667_v6  ;;  %v3095_v6 = vld [vmem:[%s4442_s4 + $0x11] ss:$0 sm:$0xff] }
0x13c4   :  { %3495 = vmatpush3.bf16.msra.mxu1 %v3565_v40 }
0x147f   :  { %v2706_v51 = vpop.f32.mrf.mxu1 }
0x1480   :  { %v2707_v58 = vadd.f32 %v3076_v30, %v2706_v51 }
0x1481   :  { %v3478_v32 = vpop.f32.mrf.mxu1 }
0x1482   :  { %v2715_v52 = vmul.f32 0.044715, %v2707_v58  ;;  %v2713_v63 = vmul.f32 0.5, %v2707_v58 }
0x1483   :  { %v2709_v53 = vpop.f32.mrf.mxu1 }
0x1484   :  { %v2717_v12 = vmul.f32 %v2715_v52, %v2707_v58  ;;  %v2710_v15 = vadd.f32 %v3076_v30, %v2709_v53 }
0x1485   :  { %v3479_v54 = vpop.f32.mrf.mxu1 }
0x1486   :  { %v2719_v55 = vmul.f32 %v2717_v12, %v2707_v58  ;;  %v2716_v50 = vmul.f32 0.044715, %v2710_v15  ;;  %v2714_v59 = vmul.f32 0.5, %v2710_v15  ;;  %v3096_v12 = vld [vmem:[%s4442_s4 + $0x12] ss:$0 sm:$0xff] }
0x1488   :  { %v2721_v57 = vadd.f32 %v2719_v55, %v2707_v58  ;;  %v2718_v60 = vmul.f32 %v2716_v50, %v2710_v15 }
0x148a   :  { %v2723_v29 = vmul.f32 0.7978846, %v2721_v57  ;;  %v2720_v61 = vmul.f32 %v2718_v60, %v2710_v15 }
0x148c   :  { %3650 = vtanh.f32 %v2723_v29  ;;  %v2722_v62 = vadd.f32 %v2720_v61, %v2710_v15 }
0x148e   :  { %v2724_v20 = vmul.f32 0.7978846, %v2722_v62 }
0x1490   :  { %3652 = vtanh.f32 %v2724_v20 }
0x1499   :  { %v3651_v1 = vpop.eup %3650 }
0x149a   :  { %v2727_v21 = vadd.f32 1.0, %v3651_v1 }
0x149c   :  { %v2729_v3 = vmul.f32 %v2727_v21, %v2713_v63 }
0x149d   :  { %v3653_v2 = vpop.eup %3652 }
0x149e   :  { %v2728_v0 = vadd.f32 1.0, %v3653_v2 }
0x14a0   :  { %v2730_v4 = vmul.f32 %v2728_v0, %v2714_v59 }
0x14a2   :  { %v2731_v5 = vpack.c.bf16 %v2730_v4, %v2729_v3 }
0x14a4   :  { %3489 = vmatmul.mubr.msk.bf16.vlgmr.msra.gmra.mxu0 %vm92_vm0, %v2731_v5 }
0x1564   :  { %v2807_v10 = vpop.f32.mrf.mxu0 }
0x1565   :  { %v2808_v26 = vadd.f32 %v3088_v9, %v2807_v10 }
0x1566   :  { %v3490_v13 = vpop.f32.mrf.mxu0 }
0x1567   :  { %v2814_v14 = vadd.f32 %v2808_v26, %v2644_v44 }
0x1568   :  { %v2810_v16 = vpop.f32.mrf.mxu0 }
0x1569   :  { %v2811_v17 = vadd.f32 %v3088_v9, %v2810_v16  ;;  %v2818_v25 = vsel %vm178_vm3, %v2814_v14, 0.0 }
0x156a   :  { %2819 = vadd.xlane.f32.xlu1 %v2818_v25  ;;  %v3491_v27 = vpop.f32.mrf.mxu0 }
0x156b   :  { %v2815_v31 = vadd.f32 %v2811_v17, %v2645_v45 }
0x156d   :  { %v2821_v19 = vsel %vm178_vm3, %v2815_v31, 0.0 }
0x156e   :  { %2822 = vadd.xlane.f32.xlu0 %v2821_v19 }
0x15f3   :  { %v2820_v11 = vpop.xlane.xlu1 %2819 }
0x15f4   :  { %v2824_v33 = vmul.f32 0.03125, %v2820_v11 }
0x15f6   :  { %v2826_v23 = vsub.f32 %v2814_v14, %v2824_v33 }
0x15f7   :  { %v2823_v28 = vpop.xlane.xlu0 %2822 }
0x15f8   :  { %v2825_v22 = vmul.f32 0.03125, %v2823_v28  ;;  %v2828_v34 = vmul.f32 %v2826_v23, %v2826_v23 }
0x15fa   :  { %v2827_v35 = vsub.f32 %v2815_v31, %v2825_v22  ;;  %v2830_v36 = vsel %vm178_vm3, %v2828_v34, 0.0 }
0x15fb   :  { %2831 = vadd.xlane.f32.xlu1 %v2830_v36 }
0x15fc   :  { %v2829_v37 = vmul.f32 %v2827_v35, %v2827_v35 }
0x15fe   :  { %v2833_v38 = vsel %vm178_vm3, %v2829_v37, 0.0 }
0x15ff   :  { %2834 = vadd.xlane.f32.xlu0 %v2833_v38 }
0x1684   :  { %v2832_v41 = vpop.xlane.xlu1 %2831 }
0x1685   :  { %v2836_v42 = vmul.f32 0.03125, %v2832_v41 }
0x1687   :  { %v2838_v43 = vadd.f32 1e-12, %v2836_v42 }
0x1688   :  { %v2835_v44 = vpop.xlane.xlu0 %2834 }
0x1689   :  { %3654 = vrsqrt.f32 %v2838_v43  ;;  %v2837_v45 = vmul.f32 0.03125, %v2835_v44 }
0x168b   :  { %v2839_v56 = vadd.f32 1e-12, %v2837_v45 }
0x168d   :  { %3656 = vrsqrt.f32 %v2839_v56 }
0x1696   :  { %v3655_v46 = vpop.eup %3654 }
0x1697   :  { %v2842_v47 = vmul.f32 %v3655_v46, %v2826_v23 }
0x1699   :  { %v2848_v51 = vmul.f32 %v3094_v48, %v2842_v47 }
0x169a   :  { %v3657_v49 = vpop.eup %3656 }
0x169b   :  { %v2843_v30 = vmul.f32 %v3657_v49, %v2827_v35  ;;  %v2854_v32 = vadd.f32 %v3095_v6, %v2848_v51 }
0x169d   :  { %v2849_v58 = vmul.f32 %v3094_v48, %v2843_v30 }
0x169f   :  { %v2855_v52 = vadd.f32 %v3095_v6, %v2849_v58 }
0x16a1   :  { %v2856_v53 = vpack.c.bf16 %v2855_v52, %v2854_v32 }
0x16a3   :  { %3497 = vmatmul.mubr.msk.bf16.vlgmr.msra.gmra.mxu1 %vm178_vm3, %v2856_v53 }
0x1763   :  { %v2915_v15 = vpop.f32.mrf.mxu1 }
0x1764   :  { %v2916_v54 = vadd.f32 %v3096_v12, %v2915_v15 }
0x1765   :  { %v3498_v55 = vpop.f32.mrf.mxu1 }
0x1766   :  { %v2923_v50 = vsel %vm2922_vm9, %v2916_v54, -inf }
0x1767   :  { %2924 = vmax.xlane.f32.xlu1 %v2923_v50  ;;  %v2918_v57 = vpop.f32.mrf.mxu1 }
0x1768   :  { %v2919_v60 = vadd.f32 %v3096_v12, %v2918_v57 }
0x1769   :  { %v3499_v29 = vpop.f32.mrf.mxu1 }
0x176a   :  { %v2926_v61 = vsel %vm2922_vm9, %v2919_v60, -inf }
0x176b   :  { %2927 = vmax.xlane.f32.xlu0 %v2926_v61 }
0x1778   :  { %2949 = vrot.lane.b32.xlu1 %v4122_v24, %s3677_s30 }
0x17f0   :  { %v2925_v62 = vpop.xlane.xlu1 %2924 }
0x17f1   :  { %v2929_v20 = vsub.f32 %v2916_v54, %v2925_v62 }
0x17f3   :  { %v2931_v1 = vmul.f32 1.442695, %v2929_v20 }
0x17f4   :  { %v2928_v21 = vpop.xlane.xlu0 %2927  ;;  %v2950_v24 = vpop.permute.xlu1 %2949 }
0x17f5   :  { %3658 = vpow2.f32 %v2931_v1  ;;  %v2930_v2 = vsub.f32 %v2919_v60, %v2928_v21  ;;  %v2963_v9 = vsel %vm178_vm3, %v3815_v7, %v2950_v24 }
0x17f7   :  { %v2933_v63 = vmul.f32 1.442695, %v2930_v2 }
0x17f9   :  { %3660 = vpow2.f32 %v2933_v63 }
0x1802   :  { %v3659_v59 = vpop.eup %3658 }
0x1803   :  { %v2935_v0 = vsel %vm2922_vm9, %v3659_v59, 0.0 }
0x1804   :  { %2936 = vadd.xlane.f32.xlu1 %v2935_v0 }
0x1806   :  { %v3661_v3 = vpop.eup %3660 }
0x1807   :  { %v2938_v4 = vsel %vm2922_vm9, %v3661_v3, 0.0 }
0x1808   :  { %2939 = vadd.xlane.f32.xlu0 %v2938_v4 }
0x1815   :  { %2957 = vrot.lane.b32.xlu1 %v2854_v32, %s3673_s18 }
0x1819   :  { %2959 = vrot.lane.b32.xlu1 %v2855_v52, %s3673_s18 }
0x181e   :  { %2951 = vrot.lane.b32.xlu0 %v4124_v18, %s3677_s30 }
0x188d   :  { %v2937_v5 = vpop.xlane.xlu1 %2936 }
0x188e   :  { %3662 = vrcp.f32 %v2937_v5 }
0x1891   :  { %v2958_v10 = vpop.permute.xlu1 %2957  ;;  %v2940_v26 = vpop.xlane.xlu0 %2939 }
0x1892   :  { %v2965_v13 = vsel %vm92_vm0, %v2963_v9, %v2958_v10  ;;  %3664 = vrcp.f32 %v2940_v26 }
0x1893   :  { %2968 = vst.msk [vmem:[%s4448_s11] sm:$0xff] %vm2967_vm10, %v2965_v13 }
0x1895   :  { %v2960_v14 = vpop.permute.xlu1 %2959  ;;  %v2952_v16 = vpop.permute.xlu0 %2951 }
0x1896   :  { %v2964_v18 = vsel %vm178_vm3, %v3817_v8, %v2952_v16 }
0x1897   :  { %v2966_v17 = vsel %vm92_vm0, %v2964_v18, %v2960_v14 }
0x1898   :  { %2969 = vst.msk [vmem:[%s4448_s11 + $0x8] sm:$0xff] %vm2967_vm10, %v2966_v17 }
0x189b   :  { %v3663_v7 = vpop.eup %3662 }
0x189c   :  { %v2942_v25 = vmul.f32 %v3663_v7, %v3659_v59 }
0x189e   :  { %2945 = vst.msk [vmem:[%s4449_s10] sm:$0xff] %vm2922_vm9, %v2942_v25 }
0x189f   :  { %v3665_v27 = vpop.eup %3664 }
0x18a0   :  { %v2944_v31 = vmul.f32 %v3665_v27, %v3661_v3 }
0x18a2   :  { %2946 = vst.msk [vmem:[%s4449_s10 + $0x8] sm:$0xff] %vm2922_vm9, %v2944_v31 }

</bundles_post_ra>
